<compile_context>
chip_gen: v6e
topology: v6e:2x2x1
jax: 0.10.0
libtpu: 0.0.40
codegen_flags: <defaults>
</compile_context>

<pallas_src>
import functools
import numpy as np
import jax
import jax.numpy as jnp
from jax.experimental import pallas as pl
from jax.experimental.pallas import tpu as pltpu


def _round_up(x, m):
    return ((x + m - 1) // m) * m


# --------------------------------------------------------------------------
# Tiled matmul + bias (MXU hot path for im2col convs and the projection)
# --------------------------------------------------------------------------

def _matmul_bias_kernel(a_ref, b_ref, bias_ref, o_ref, acc_ref):
    @pl.when(pl.program_id(2) == 0)
    def _():
        acc_ref[...] = jnp.zeros_like(acc_ref)
    acc_ref[...] += jnp.dot(a_ref[...], b_ref[...],
                            preferred_element_type=jnp.float32)
    o_ref[...] = acc_ref[...] + bias_ref[...]


def matmul_bias(a, b, bias, *, operand_dtype=jnp.bfloat16,
                tm=256, tn=256, tk=512):
    """(M,K) @ (K,N) + bias, tiled/pipelined, padded to (8,128)-aligned tiles."""
    M, K = a.shape
    N = b.shape[1]
    tm = min(tm, _round_up(M, 8))
    tn = min(tn, _round_up(N, 128))
    tk = min(tk, _round_up(K, 128))
    Mp, Kp, Np = _round_up(M, tm), _round_up(K, tk), _round_up(N, tn)
    a_p = jnp.pad(a, ((0, Mp - M), (0, Kp - K))).astype(operand_dtype)
    b_p = jnp.pad(b, ((0, Kp - K), (0, Np - N))).astype(operand_dtype)
    bias_p = jnp.pad(bias.reshape(1, N).astype(jnp.float32),
                     ((0, 0), (0, Np - N)))
    out = pl.pallas_call(
        _matmul_bias_kernel,
        out_shape=jax.ShapeDtypeStruct((Mp, Np), jnp.float32),
        grid=(Mp // tm, Np // tn, Kp // tk),
        in_specs=[pl.BlockSpec((tm, tk), lambda i, j, k: (i, k)),
                  pl.BlockSpec((tk, tn), lambda i, j, k: (k, j)),
                  pl.BlockSpec((1, tn), lambda i, j, k: (0, j))],
        out_specs=pl.BlockSpec((tm, tn), lambda i, j, k: (i, j)),
        scratch_shapes=[pltpu.VMEM((tm, tn), jnp.float32)],
        compiler_params=pltpu.CompilerParams(
            dimension_semantics=("parallel", "parallel", "arbitrary"),
            vmem_limit_bytes=32 * 1024 * 1024),
    )(a_p, b_p, bias_p)
    return out[:M, :N]


# --------------------------------------------------------------------------
# Fused spectral front-end: CWT (lane-dense) + rFFT amplitude, one launch
# --------------------------------------------------------------------------

def _spectral_kernel(x_ref, wc_ref, cos_ref, sin_ref, cwt_ref, amp_ref):
    x = x_ref[...]                                              # (B*N, T) f32
    cwt_ref[...] = jnp.dot(x.astype(jnp.bfloat16), wc_ref[...],
                           preferred_element_type=jnp.float32)  # (B*N, S*T)
    re = jnp.dot(x, cos_ref[...], preferred_element_type=jnp.float32)
    im = jnp.dot(x, sin_ref[...], preferred_element_type=jnp.float32)
    amp_ref[...] = jnp.sqrt(re * re + im * im)                  # (B*N, F)


def spectral_frontend(x2, wcwt, dft_cos, dft_sin):
    BN, T = x2.shape
    ST = wcwt.shape[1]
    F = dft_cos.shape[1]
    return pl.pallas_call(
        _spectral_kernel,
        out_shape=(jax.ShapeDtypeStruct((BN, ST), jnp.float32),
                   jax.ShapeDtypeStruct((BN, F), jnp.float32)),
        grid=(1,),
        in_specs=[pl.BlockSpec((BN, T), lambda i: (0, 0)),
                  pl.BlockSpec((T, ST), lambda i: (0, 0)),
                  pl.BlockSpec((T, F), lambda i: (0, 0)),
                  pl.BlockSpec((T, F), lambda i: (0, 0))],
        out_specs=[pl.BlockSpec((BN, ST), lambda i: (0, 0)),
                   pl.BlockSpec((BN, F), lambda i: (0, 0))],
    )(x2, wcwt, dft_cos, dft_sin)


# --------------------------------------------------------------------------
# Depthwise scale conv (Conv2d kernel=(8,1), groups=C) — single launch
# --------------------------------------------------------------------------

def _scale_conv_kernel(x_ref, w_ref, b_ref, o_ref, *, B):
    w = w_ref[...]                                              # (S, N)
    bias = b_ref[...]                                           # (1, N)
    for b in range(B):                                          # static unroll
        xb = x_ref[b]                                           # (S, T, N)
        o_ref[b] = jnp.sum(xb * w[:, None, :], axis=0) + bias


def scale_conv_pallas(x, w, b):
    B, S, T, N = x.shape
    assert S == 8, "scale_conv is only equivalent to Conv2d(kernel=(8,1)) for S==8"
    return pl.pallas_call(
        functools.partial(_scale_conv_kernel, B=B),
        out_shape=jax.ShapeDtypeStruct((B, T, N), jnp.float32),
        grid=(1,),
        in_specs=[pl.BlockSpec((B, S, T, N), lambda i: (0, 0, 0, 0)),
                  pl.BlockSpec((S, N), lambda i: (0, 0)),
                  pl.BlockSpec((1, N), lambda i: (0, 0))],
        out_specs=pl.BlockSpec((B, T, N), lambda i: (0, 0, 0)),
    )(x, w, b)


# --------------------------------------------------------------------------
# DCTChannelBlock (DCT-II + LayerNorm + 1x1-conv gate) — single launch
# --------------------------------------------------------------------------

def _dct_block_kernel(x_ref, d_ref, g_ref, beta_ref, w1_ref, w2_ref, o_ref,
                      *, B, C):
    x = x_ref[...]                                              # (B*C, T)
    s = jnp.dot(x, d_ref[...], preferred_element_type=jnp.float32)   # 2*DCT-II
    mu = jnp.mean(s, axis=-1, keepdims=True)
    var = jnp.mean(jnp.square(s - mu), axis=-1, keepdims=True)
    sn = (s - mu) * jax.lax.rsqrt(var + 1e-6) * g_ref[...] + beta_ref[...]
    w1 = w1_ref[...]                                            # (2C, C)
    w2 = w2_ref[...]                                            # (C, 2C)
    for b in range(B):                                          # static unroll
        sn_b = sn[b * C:(b + 1) * C, :]
        h = jnp.maximum(jnp.dot(w1, sn_b, preferred_element_type=jnp.float32),
                        0.0)
        lr = jax.nn.sigmoid(jnp.dot(w2, h, preferred_element_type=jnp.float32))
        o_ref[b * C:(b + 1) * C, :] = x[b * C:(b + 1) * C, :] * lr


def dct_block_pallas(x_bct, dct_mat, ln_g, ln_b, w1, w2, *, B, C):
    BC, T = x_bct.shape
    C2 = w1.shape[0]
    return pl.pallas_call(
        functools.partial(_dct_block_kernel, B=B, C=C),
        out_shape=jax.ShapeDtypeStruct((BC, T), jnp.float32),
        grid=(1,),
        in_specs=[pl.BlockSpec((BC, T), lambda i: (0, 0)),
                  pl.BlockSpec((T, T), lambda i: (0, 0)),
                  pl.BlockSpec((1, T), lambda i: (0, 0)),
                  pl.BlockSpec((1, T), lambda i: (0, 0)),
                  pl.BlockSpec((C2, C), lambda i: (0, 0)),
                  pl.BlockSpec((C, C2), lambda i: (0, 0))],
        out_specs=pl.BlockSpec((BC, T), lambda i: (0, 0)),
    )(x_bct, dct_mat, ln_g, ln_b, w1, w2)


# --------------------------------------------------------------------------
# Fused Inception conv (im2col glue in JAX, one tiled Pallas matmul per block)
# --------------------------------------------------------------------------

def _im2col(x_nhwc, ksz):
    B, H, W, C = x_nhwc.shape
    p = (ksz - 1) // 2
    xp = jnp.pad(x_nhwc, ((0, 0), (p, p), (p, p), (0, 0)))
    cols = []
    for dh in range(ksz):
        for dw in range(ksz):
            cols.append(xp[:, dh:dh + H, dw:dw + W, :])
    pat = jnp.concatenate(cols, axis=-1)                        # (B,H,W,C*k*k)
    return pat.reshape(B * H * W, C * ksz * ksz)


def inception_apply(x_nhwc, wmat, bias, ksizes):
    # TODO(synk): patch formation still materializes k^2 shifted copies outside
    # the kernel; at production shapes a halo-BlockSpec in-kernel conv would
    # turn this into free vld traffic under the matmul.
    B, H, W, _ = x_nhwc.shape
    pat = jnp.concatenate([_im2col(x_nhwc, ks) for ks in ksizes], axis=1)
    out = matmul_bias(pat, wmat, bias, operand_dtype=jnp.bfloat16)
    return out.reshape(B, H, W, wmat.shape[1])


# TODO(synk): Inception_Block_V1/V2 source was not provided; this uses the
# standard TimesNet Inception_Block_V1 (parallel odd-size convs, averaged),
# which is what the original repo imports (tib==1 path).
def period_conv_apply(x_nhwc, params, ksizes):
    y = inception_apply(x_nhwc, params['inc1_wmat'], params['inc1_bias'], ksizes)
    y = jax.nn.gelu(y, approximate=False)                       # nn.GELU() = erf
    y = inception_apply(y, params['inc2_wmat'], params['inc2_bias'], ksizes)
    return y


# --------------------------------------------------------------------------
# Constant operator builders (DFT / DCT-II / Morlet-CWT as matmuls)
# --------------------------------------------------------------------------

def build_dft_mats(T):
    F = T // 2 + 1
    t = np.arange(T)[:, None]
    f = np.arange(F)[None, :]
    ang = 2.0 * np.pi * f * t / T
    return np.cos(ang).astype(np.float32), (-np.sin(ang)).astype(np.float32)


def build_dct_mat(T):
    # reference dct(x, norm=None) == 2 * DCT-II
    n = np.arange(T)[:, None]
    kk = np.arange(T)[None, :]
    return (2.0 * np.cos(np.pi * (2 * n + 1) * kk / (2.0 * T))).astype(np.float32)


# TODO(synk): ptwt.cwt('morl') is replaced by its exact equivalent linear
# operator (pywt 'conv'-method algorithm applied to the identity); applied as
# one lane-dense matmul in the spectral front-end kernel.
def build_cwt_operator(scales, T, precision=10):
    npts = 2 ** precision
    xg = np.linspace(-8.0, 8.0, npts)
    psi = np.exp(-xg ** 2 / 2.0) * np.cos(5.0 * xg)             # Morlet
    step = xg[1] - xg[0]
    int_psi = np.cumsum(psi) * step
    mats = []
    for a in scales:
        j = np.arange(a * (xg[-1] - xg[0]) + 1) / (a * step)
        j = j.astype(int)
        j = j[j < int_psi.size]
        filt = int_psi[j][::-1]
        W = np.zeros((T, T), dtype=np.float64)
        for t in range(T):
            e = np.zeros(T); e[t] = 1.0
            conv = np.convolve(e, filt)
            coef = -np.sqrt(a) * np.diff(conv)
            d = (coef.shape[-1] - T) / 2.0
            if d > 0:
                coef = coef[int(np.floor(d)): -int(np.ceil(d))]
            W[t, :] = coef[:T]                                  # response to delta at t
        mats.append(W)
    return np.concatenate(mats, axis=1).astype(np.float32)      # (T, S*T)


# --------------------------------------------------------------------------
# End-to-end forward (fully jittable; no host sync)
# --------------------------------------------------------------------------

def wavelet_forward(x, params, cfg):
    B, T, N = x.shape
    spp = cfg['seq_len'] + cfg['pred_len']
    assert T == spp
    k = cfg['top_k']
    F = T // 2 + 1
    S = 8
    ksizes = tuple(2 * i + 1 for i in range(cfg['num_kernels']))

    # ---- fused spectral front-end (DFT amplitude + CWT), one pallas_call ----
    x2 = jnp.transpose(x, (0, 2, 1)).reshape(B * N, T)          # (B*N, T)
    cwt_flat, amp = spectral_frontend(x2, params['cwt_op'],
                                      params['dft_cos'], params['dft_sin'])
    amp = amp.reshape(B, N, F)

    # ---- device-side top-k ----
    freq = amp.mean(axis=(0, 1)).at[0].set(0.0)                 # (F,)
    _, top_idx = jax.lax.top_k(freq, k)                         # (k,) traced
    period_weight = amp.mean(axis=1)[:, top_idx]                # (B, k)

    # ---- TimesNet period branches over the static candidate-period set ----
    # TODO(synk): for large T the unique-candidate set grows; a one-off host
    # fetch of k scalars may then be preferable to enumerating every candidate.
    period_table = np.array([T] + [T // f for f in range(1, F)])  # f=0 -> T (no div-by-0)
    unique_periods = sorted({int(p) for p in period_table}, reverse=True)
    branch_of_freq = jnp.asarray(
        np.array([unique_periods.index(int(period_table[f])) for f in range(F)],
                 dtype=np.int32))

    branch_outs = []
    for period in unique_periods:                               # static loop
        if spp % period != 0:
            length = (spp // period + 1) * period
            padded = jnp.concatenate(
                [x, jnp.zeros((B, length - spp, N), x.dtype)], axis=1)
        else:
            length = spp
            padded = x
        out = padded.reshape(B, length // period, period, N)    # NHWC (C = N)
        out = period_conv_apply(out, params, ksizes)
        out = out.reshape(B, -1, N)[:, :spp, :]
        branch_outs.append(out)
    branches = jnp.stack(branch_outs, axis=0)                   # (P, B, T, N)

    sel = branch_of_freq[top_idx]                               # (k,) traced
    res_sel = branches[sel]                                     # (k, B, T, N)
    pw = jax.nn.softmax(period_weight, axis=1)                  # (B, k)
    period_part = jnp.einsum('kbtn,bk->btn', res_sel, pw)

    # ---- wavelet (CWT) branch ----
    coeffs = cwt_flat.reshape(B, N, S, T).transpose(0, 2, 3, 1)  # (B, S, T, N)
    w_out = period_conv_apply(coeffs, params, ksizes)
    wavelet_res = scale_conv_pallas(w_out, params['scale_w'], params['scale_b'])

    pc10 = cfg['period_coeff'] ** 10
    out = (1.0 - pc10) * wavelet_res + pc10 * period_part + x

    # ---- DCT channel gating ----
    r_ct = jnp.transpose(out, (0, 2, 1)).reshape(B * N, T)
    dct_out = dct_block_pallas(r_ct, params['dct_mat'], params['ln_g'],
                               params['ln_b'], params['fc1_w'], params['fc2_w'],
                               B=B, C=N)
    out = dct_out.reshape(B, N, T).transpose(0, 2, 1) + x

    # ---- projection Linear(T -> pred_len) over the time axis ----
    r_ct = jnp.transpose(out, (0, 2, 1)).reshape(B * N, T)
    proj = matmul_bias(r_ct, params['proj_w'], params['proj_b'],
                       operand_dtype=jnp.float32)
    return proj.reshape(B, N, cfg['pred_len']).transpose(0, 2, 1)


# TODO(synk): stss/msdcn/fib/dss are constructed in __init__ but gated off by
# use_swift_modules=False in the reference forward, so they are omitted here.

# --------------------------------------------------------------------------
# Deterministic parameter init
# --------------------------------------------------------------------------

def init_params(cfg, key):
    T = cfg['seq_len'] + cfg['pred_len']
    N, dff, P, nk = cfg['d_model'], cfg['d_ff'], cfg['pred_len'], cfg['num_kernels']
    ksizes = tuple(2 * i + 1 for i in range(nk))
    scales = 2.0 ** np.linspace(-1, cfg['wavelet_scale'], 8)
    dft_cos, dft_sin = build_dft_mats(T)

    def nrm(k_, shape, fan_in):
        return jax.random.normal(k_, shape, jnp.float32) / np.sqrt(fan_in)

    keys = jax.random.split(key, 8)

    def inception_params(k_, cin, cout):
        ws, bs = [], []
        subkeys = jax.random.split(k_, 2 * len(ksizes))
        for i, ks in enumerate(ksizes):
            fan = cin * ks * ks
            w = nrm(subkeys[2 * i], (cout, cin, ks, ks), fan)    # torch layout
            b = nrm(subkeys[2 * i + 1], (cout,), fan)
            # row index = (dh*k + dw)*cin + c, matching the im2col patch layout
            ws.append(jnp.transpose(w, (2, 3, 1, 0)).reshape(ks * ks * cin, cout))
            bs.append(b)
        wmat = jnp.concatenate(ws, axis=0) / float(len(ksizes))  # averaging folded in
        bias = jnp.stack(bs).mean(axis=0)
        return wmat, bias

    inc1_wmat, inc1_bias = inception_params(keys[0], N, dff)
    inc2_wmat, inc2_bias = inception_params(keys[1], dff, N)

    return {
        'dft_cos': jnp.asarray(dft_cos),                         # (T, F)
        'dft_sin': jnp.asarray(dft_sin),                         # (T, F)
        'cwt_op': jnp.asarray(build_cwt_operator(scales, T)).astype(jnp.bfloat16),
        'dct_mat': jnp.asarray(build_dct_mat(T)),                # (T, T)
        'inc1_wmat': inc1_wmat, 'inc1_bias': inc1_bias,
        'inc2_wmat': inc2_wmat, 'inc2_bias': inc2_bias,
        # depthwise scale_conv: torch weight (N,1,8,1) stored as (8,N)
        'scale_w': nrm(keys[2], (8, N), 8),
        'scale_b': nrm(keys[3], (1, N), 8),
        # DCTChannelBlock params
        'ln_g': jnp.ones((1, T), jnp.float32),
        'ln_b': jnp.zeros((1, T), jnp.float32),
        'fc1_w': nrm(keys[4], (2 * N, N), N),
        'fc2_w': nrm(keys[5], (N, 2 * N), 2 * N),
        # projection Linear(T, P): stored transposed (T, P)
        'proj_w': nrm(keys[6], (T, P), T),
        'proj_b': nrm(keys[7], (P,), T),
    }


# --------------------------------------------------------------------------

if __name__ == "__main__":
    cfg = dict(seq_len=8, pred_len=8, top_k=2, d_model=8, d_ff=16,
               num_kernels=2, period_coeff=0.5, wavelet_scale=4, tib=1)
    B = 2
    T = cfg['seq_len'] + cfg['pred_len']
    N = cfg['d_model']

    key = jax.random.PRNGKey(0)
    kx, kp = jax.random.split(key)
    x = jax.random.normal(kx, (B, T, N), jnp.float32)
    params = init_params(cfg, kp)

    fwd = jax.jit(functools.partial(wavelet_forward, cfg=cfg))
    out = fwd(x, params)
    out = jax.block_until_ready(out)

    assert out.shape == (B, cfg['pred_len'], N), out.shape
    assert bool(jnp.all(jnp.isfinite(out)))
    print("KERNEL_OK")
</pallas_src>

<mosaic_0001>
module attributes {stable_mosaic.version = 11 : i64} {
  func.func @_spectral_kernel(%arg0: i32, %arg1: memref<16x16xf32, #tpu.memory_space<vmem>>, %arg2: memref<16x128xbf16, #tpu.memory_space<vmem>>, %arg3: memref<16x9xf32, #tpu.memory_space<vmem>>, %arg4: memref<16x9xf32, #tpu.memory_space<vmem>>, %arg5: memref<16x128xf32, #tpu.memory_space<vmem>>, %arg6: memref<16x9xf32, #tpu.memory_space<vmem>>) attributes {dimension_semantics = [#tpu.dimension_semantics<arbitrary>], iteration_bounds = array<i64: 1>, scalar_prefetch = 0 : i64, scratch_operands = 0 : i64, tpu.core_type = #tpu.core_type<tc>, window_params = [{pipeline_mode = #tpu.pipeline_mode<synchronous>, transform_indices = @transform_0, window_bounds = array<i64: 16, 16>}, {pipeline_mode = #tpu.pipeline_mode<synchronous>, transform_indices = @transform_1, window_bounds = array<i64: 16, 128>}, {pipeline_mode = #tpu.pipeline_mode<synchronous>, transform_indices = @transform_2, window_bounds = array<i64: 16, 9>}, {pipeline_mode = #tpu.pipeline_mode<synchronous>, transform_indices = @transform_3, window_bounds = array<i64: 16, 9>}, {pipeline_mode = #tpu.pipeline_mode<synchronous>, transform_indices = @transform_4, window_bounds = array<i64: 16, 128>}, {pipeline_mode = #tpu.pipeline_mode<synchronous>, transform_indices = @transform_5, window_bounds = array<i64: 16, 9>}]} {
    %c0 = arith.constant 0 : index
    %c0_0 = arith.constant 0 : index
    %0 = vector.load %arg1[%c0, %c0_0] : memref<16x16xf32, #tpu.memory_space<vmem>>, vector<16x16xf32>
    %1 = arith.truncf %0 : vector<16x16xf32> to vector<16x16xbf16>
    %c0_1 = arith.constant 0 : index
    %c0_2 = arith.constant 0 : index
    %2 = vector.load %arg2[%c0_1, %c0_2] : memref<16x128xbf16, #tpu.memory_space<vmem>>, vector<16x128xbf16>
    %cst = arith.constant dense<0.000000e+00> : vector<16x128xf32>
    %3 = tpu.matmul %1, %2, %cst {dimension_numbers = #tpu.dot_dimension_numbers<[1], [0], [0], [1], [0, 0, 1, 1], [], []>} : vector<16x16xbf16>, vector<16x128xbf16>, vector<16x128xf32> -> vector<16x128xf32>
    %c0_3 = arith.constant 0 : index
    %c0_4 = arith.constant 0 : index
    %4 = vector.load %arg5[%c0_3, %c0_4] : memref<16x128xf32, #tpu.memory_space<vmem>>, vector<16x128xf32>
    tpu.vector_store %arg5[%c0_3, %c0_4], %3 {strides = array<i32>} : memref<16x128xf32, #tpu.memory_space<vmem>>, vector<16x128xf32>,
    %c0_5 = arith.constant 0 : index
    %c0_6 = arith.constant 0 : index
    %5 = vector.load %arg3[%c0_5, %c0_6] : memref<16x9xf32, #tpu.memory_space<vmem>>, vector<16x9xf32>
    %cst_7 = arith.constant dense<0.000000e+00> : vector<16x9xf32>
    %6 = tpu.matmul %0, %5, %cst_7 {dimension_numbers = #tpu.dot_dimension_numbers<[1], [0], [0], [1], [0, 0, 1, 1], [], []>} : vector<16x16xf32>, vector<16x9xf32>, vector<16x9xf32> -> vector<16x9xf32>
    %c0_8 = arith.constant 0 : index
    %c0_9 = arith.constant 0 : index
    %7 = vector.load %arg4[%c0_8, %c0_9] : memref<16x9xf32, #tpu.memory_space<vmem>>, vector<16x9xf32>
    %cst_10 = arith.constant dense<0.000000e+00> : vector<16x9xf32>
    %8 = tpu.matmul %0, %7, %cst_10 {dimension_numbers = #tpu.dot_dimension_numbers<[1], [0], [0], [1], [0, 0, 1, 1], [], []>} : vector<16x16xf32>, vector<16x9xf32>, vector<16x9xf32> -> vector<16x9xf32>
    %9 = arith.mulf %6, %6 : vector<16x9xf32>
    %10 = arith.mulf %8, %8 : vector<16x9xf32>
    %11 = arith.addf %9, %10 : vector<16x9xf32>
    %12 = math.sqrt %11 : vector<16x9xf32>
    %c0_11 = arith.constant 0 : index
    %c0_12 = arith.constant 0 : index
    %13 = vector.load %arg6[%c0_11, %c0_12] : memref<16x9xf32, #tpu.memory_space<vmem>>, vector<16x9xf32>
    tpu.vector_store %arg6[%c0_11, %c0_12], %12 {strides = array<i32>} : memref<16x9xf32, #tpu.memory_space<vmem>>, vector<16x9xf32>,
    return
  }
  func.func @transform_0(%arg0: i32) -> (i32, i32) {
    %c0_i32 = arith.constant 0 : i32
    %c0_i32_0 = arith.constant 0 : i32
    %c0_i32_1 = arith.constant 0 : i32
    return %c0_i32, %c0_i32_0 : i32, i32
  }
  func.func @transform_1(%arg0: i32) -> (i32, i32) {
    %c0_i32 = arith.constant 0 : i32
    %c0_i32_0 = arith.constant 0 : i32
    %c0_i32_1 = arith.constant 0 : i32
    return %c0_i32, %c0_i32_0 : i32, i32
  }
  func.func @transform_2(%arg0: i32) -> (i32, i32) {
    %c0_i32 = arith.constant 0 : i32
    %c0_i32_0 = arith.constant 0 : i32
    %c0_i32_1 = arith.constant 0 : i32
    return %c0_i32, %c0_i32_0 : i32, i32
  }
  func.func @transform_3(%arg0: i32) -> (i32, i32) {
    %c0_i32 = arith.constant 0 : i32
    %c0_i32_0 = arith.constant 0 : i32
    %c0_i32_1 = arith.constant 0 : i32
    return %c0_i32, %c0_i32_0 : i32, i32
  }
  func.func @transform_4(%arg0: i32) -> (i32, i32) {
    %c0_i32 = arith.constant 0 : i32
    %c0_i32_0 = arith.constant 0 : i32
    %c0_i32_1 = arith.constant 0 : i32
    return %c0_i32, %c0_i32_0 : i32, i32
  }
  func.func @transform_5(%arg0: i32) -> (i32, i32) {
    %c0_i32 = arith.constant 0 : i32
    %c0_i32_0 = arith.constant 0 : i32
    %c0_i32_1 = arith.constant 0 : i32
    return %c0_i32, %c0_i32_0 : i32, i32
  }
}

module attributes {stable_mosaic.version = 11 : i64} {
  func.func @_matmul_bias_kernel(%arg0: i32, %arg1: i32, %arg2: i32, %arg3: memref<256x128xbf16, #tpu.memory_space<vmem>>, %arg4: memref<128x128xbf16, #tpu.memory_space<vmem>>, %arg5: memref<1x128xf32, #tpu.memory_space<vmem>>, %arg6: memref<256x128xf32, #tpu.memory_space<vmem>>, %arg7: memref<256x128xf32, #tpu.memory_space<vmem>>) attributes {dimension_semantics = [#tpu.dimension_semantics<parallel>, #tpu.dimension_semantics<parallel>, #tpu.dimension_semantics<arbitrary>], iteration_bounds = array<i64: 1, 1, 1>, scalar_prefetch = 0 : i64, scratch_operands = 1 : i64, tpu.core_type = #tpu.core_type<tc>, window_params = [{transform_indices = @transform_0, window_bounds = array<i64: 256, 128>}, {transform_indices = @transform_1, window_bounds = array<i64: 128, 128>}, {transform_indices = @transform_2, window_bounds = array<i64: 1, 128>}, {transform_indices = @transform_3, window_bounds = array<i64: 256, 128>}]} {
    %c0_i32 = arith.constant 0 : i32
    %0 = arith.cmpi eq, %arg2, %c0_i32 : i32
    %1 = arith.extui %0 : i1 to i32
    %c0_i32_0 = arith.constant 0 : i32
    %2 = arith.cmpi ne, %1, %c0_i32_0 : i32
    scf.if %2 {
      %cst_14 = arith.constant 0.000000e+00 : f32
      %14 = vector.broadcast %cst_14 : f32 to vector<256x128xf32>
      %c0_15 = arith.constant 0 : index
      %c0_16 = arith.constant 0 : index
      %15 = vector.load %arg7[%c0_15, %c0_16] : memref<256x128xf32, #tpu.memory_space<vmem>>, vector<256x128xf32>
      tpu.vector_store %arg7[%c0_15, %c0_16], %14 {strides = array<i32>} : memref<256x128xf32, #tpu.memory_space<vmem>>, vector<256x128xf32>,
    } else {
    }
    %c0 = arith.constant 0 : index
    %c0_1 = arith.constant 0 : index
    %3 = vector.load %arg7[%c0, %c0_1] : memref<256x128xf32, #tpu.memory_space<vmem>>, vector<256x128xf32>
    %c0_2 = arith.constant 0 : index
    %c0_3 = arith.constant 0 : index
    %4 = vector.load %arg3[%c0_2, %c0_3] : memref<256x128xbf16, #tpu.memory_space<vmem>>, vector<256x128xbf16>
    %c0_4 = arith.constant 0 : index
    %c0_5 = arith.constant 0 : index
    %5 = vector.load %arg4[%c0_4, %c0_5] : memref<128x128xbf16, #tpu.memory_space<vmem>>, vector<128x128xbf16>
    %cst = arith.constant dense<0.000000e+00> : vector<256x128xf32>
    %6 = tpu.matmul %4, %5, %cst {dimension_numbers = #tpu.dot_dimension_numbers<[1], [0], [0], [1], [0, 0, 1, 1], [], []>} : vector<256x128xbf16>, vector<128x128xbf16>, vector<256x128xf32> -> vector<256x128xf32>
    %7 = arith.addf %3, %6 : vector<256x128xf32>
    %c0_6 = arith.constant 0 : index
    %c0_7 = arith.constant 0 : index
    %8 = vector.load %arg7[%c0_6, %c0_7] : memref<256x128xf32, #tpu.memory_space<vmem>>, vector<256x128xf32>
    tpu.vector_store %arg7[%c0_6, %c0_7], %7 {strides = array<i32>} : memref<256x128xf32, #tpu.memory_space<vmem>>, vector<256x128xf32>,
    %c0_8 = arith.constant 0 : index
    %c0_9 = arith.constant 0 : index
    %9 = vector.load %arg7[%c0_8, %c0_9] : memref<256x128xf32, #tpu.memory_space<vmem>>, vector<256x128xf32>
    %c0_10 = arith.constant 0 : index
    %c0_11 = arith.constant 0 : index
    %10 = vector.load %arg5[%c0_10, %c0_11] : memref<1x128xf32, #tpu.memory_space<vmem>>, vector<1x128xf32>
    %11 = vector.broadcast %10 : vector<1x128xf32> to vector<256x128xf32>
    %12 = arith.addf %9, %11 : vector<256x128xf32>
    %c0_12 = arith.constant 0 : index
    %c0_13 = arith.constant 0 : index
    %13 = vector.load %arg6[%c0_12, %c0_13] : memref<256x128xf32, #tpu.memory_space<vmem>>, vector<256x128xf32>
    tpu.vector_store %arg6[%c0_12, %c0_13], %12 {strides = array<i32>} : memref<256x128xf32, #tpu.memory_space<vmem>>, vector<256x128xf32>,
    return
  }
  func.func @transform_0(%arg0: i32, %arg1: i32, %arg2: i32) -> (i32, i32) {
    %c0_i32 = arith.constant 0 : i32
    return %arg0, %arg2 : i32, i32
  }
  func.func @transform_1(%arg0: i32, %arg1: i32, %arg2: i32) -> (i32, i32) {
    %c0_i32 = arith.constant 0 : i32
    return %arg2, %arg1 : i32, i32
  }
  func.func @transform_2(%arg0: i32, %arg1: i32, %arg2: i32) -> (i32, i32) {
    %c0_i32 = arith.constant 0 : i32
    %c0_i32_0 = arith.constant 0 : i32
    return %c0_i32, %arg1 : i32, i32
  }
  func.func @transform_3(%arg0: i32, %arg1: i32, %arg2: i32) -> (i32, i32) {
    %c0_i32 = arith.constant 0 : i32
    return %arg0, %arg1 : i32, i32
  }
}

module attributes {stable_mosaic.version = 11 : i64} {
  func.func @_scale_conv_kernel(%arg0: i32, %arg1: memref<2x8x16x8xf32, #tpu.memory_space<vmem>>, %arg2: memref<8x8xf32, #tpu.memory_space<vmem>>, %arg3: memref<1x8xf32, #tpu.memory_space<vmem>>, %arg4: memref<2x16x8xf32, #tpu.memory_space<vmem>>) attributes {dimension_semantics = [#tpu.dimension_semantics<arbitrary>], iteration_bounds = array<i64: 1>, scalar_prefetch = 0 : i64, scratch_operands = 0 : i64, tpu.core_type = #tpu.core_type<tc>, window_params = [{pipeline_mode = #tpu.pipeline_mode<synchronous>, transform_indices = @transform_0, window_bounds = array<i64: 2, 8, 16, 8>}, {pipeline_mode = #tpu.pipeline_mode<synchronous>, transform_indices = @transform_1, window_bounds = array<i64: 8, 8>}, {pipeline_mode = #tpu.pipeline_mode<synchronous>, transform_indices = @transform_2, window_bounds = array<i64: 1, 8>}, {pipeline_mode = #tpu.pipeline_mode<synchronous>, transform_indices = @transform_3, window_bounds = array<i64: 2, 16, 8>}]} {
    %c0 = arith.constant 0 : index
    %c0_0 = arith.constant 0 : index
    %0 = vector.load %arg2[%c0, %c0_0] : memref<8x8xf32, #tpu.memory_space<vmem>>, vector<8x8xf32>
    %c0_1 = arith.constant 0 : index
    %c0_2 = arith.constant 0 : index
    %1 = vector.load %arg3[%c0_1, %c0_2] : memref<1x8xf32, #tpu.memory_space<vmem>>, vector<1x8xf32>
    %c0_3 = arith.constant 0 : index
    %c0_4 = arith.constant 0 : index
    %c0_5 = arith.constant 0 : index
    %c0_6 = arith.constant 0 : index
    %2 = vector.load %arg1[%c0_3, %c0_4, %c0_5, %c0_6] : memref<2x8x16x8xf32, #tpu.memory_space<vmem>>, vector<1x8x16x8xf32>
    %3 = vector.shape_cast %2 : vector<1x8x16x8xf32> to vector<8x16x8xf32>
    %4 = vector.shape_cast %0 : vector<8x8xf32> to vector<8x1x8xf32>
    %5 = vector.broadcast %4 : vector<8x1x8xf32> to vector<8x16x8xf32>
    %6 = arith.mulf %3, %5 : vector<8x16x8xf32>
    %cst = arith.constant dense<0.000000e+00> : vector<16x8xf32>
    %7 = vector.multi_reduction <add>, %6, %cst [0] : vector<8x16x8xf32> to vector<16x8xf32>
    %8 = vector.broadcast %1 : vector<1x8xf32> to vector<16x8xf32>
    %9 = arith.addf %7, %8 : vector<16x8xf32>
    %c0_7 = arith.constant 0 : index
    %c0_8 = arith.constant 0 : index
    %c0_9 = arith.constant 0 : index
    %10 = vector.load %arg4[%c0_7, %c0_8, %c0_9] : memref<2x16x8xf32, #tpu.memory_space<vmem>>, vector<1x16x8xf32>
    %11 = vector.shape_cast %10 : vector<1x16x8xf32> to vector<16x8xf32>
    %12 = vector.shape_cast %9 : vector<16x8xf32> to vector<1x16x8xf32>
    tpu.vector_store %arg4[%c0_7, %c0_8, %c0_9], %12 {strides = array<i32>} : memref<2x16x8xf32, #tpu.memory_space<vmem>>, vector<1x16x8xf32>,
    %c1 = arith.constant 1 : index
    %c0_10 = arith.constant 0 : index
    %c0_11 = arith.constant 0 : index
    %c0_12 = arith.constant 0 : index
    %13 = vector.load %arg1[%c1, %c0_10, %c0_11, %c0_12] : memref<2x8x16x8xf32, #tpu.memory_space<vmem>>, vector<1x8x16x8xf32>
    %14 = vector.shape_cast %13 : vector<1x8x16x8xf32> to vector<8x16x8xf32>
    %15 = vector.shape_cast %0 : vector<8x8xf32> to vector<8x1x8xf32>
    %16 = vector.broadcast %15 : vector<8x1x8xf32> to vector<8x16x8xf32>
    %17 = arith.mulf %14, %16 : vector<8x16x8xf32>
    %cst_13 = arith.constant dense<0.000000e+00> : vector<16x8xf32>
    %18 = vector.multi_reduction <add>, %17, %cst_13 [0] : vector<8x16x8xf32> to vector<16x8xf32>
    %19 = vector.broadcast %1 : vector<1x8xf32> to vector<16x8xf32>
    %20 = arith.addf %18, %19 : vector<16x8xf32>
    %c1_14 = arith.constant 1 : index
    %c0_15 = arith.constant 0 : index
    %c0_16 = arith.constant 0 : index
    %21 = vector.load %arg4[%c1_14, %c0_15, %c0_16] : memref<2x16x8xf32, #tpu.memory_space<vmem>>, vector<1x16x8xf32>
    %22 = vector.shape_cast %21 : vector<1x16x8xf32> to vector<16x8xf32>
    %23 = vector.shape_cast %20 : vector<16x8xf32> to vector<1x16x8xf32>
    tpu.vector_store %arg4[%c1_14, %c0_15, %c0_16], %23 {strides = array<i32>} : memref<2x16x8xf32, #tpu.memory_space<vmem>>, vector<1x16x8xf32>,
    return
  }
  func.func @transform_0(%arg0: i32) -> (i32, i32, i32, i32) {
    %c0_i32 = arith.constant 0 : i32
    %c0_i32_0 = arith.constant 0 : i32
    %c0_i32_1 = arith.constant 0 : i32
    %c0_i32_2 = arith.constant 0 : i32
    %c0_i32_3 = arith.constant 0 : i32
    return %c0_i32, %c0_i32_0, %c0_i32_1, %c0_i32_2 : i32, i32, i32, i32
  }
  func.func @transform_1(%arg0: i32) -> (i32, i32) {
    %c0_i32 = arith.constant 0 : i32
    %c0_i32_0 = arith.constant 0 : i32
    %c0_i32_1 = arith.constant 0 : i32
    return %c0_i32, %c0_i32_0 : i32, i32
  }
  func.func @transform_2(%arg0: i32) -> (i32, i32) {
    %c0_i32 = arith.constant 0 : i32
    %c0_i32_0 = arith.constant 0 : i32
    %c0_i32_1 = arith.constant 0 : i32
    return %c0_i32, %c0_i32_0 : i32, i32
  }
  func.func @transform_3(%arg0: i32) -> (i32, i32, i32) {
    %c0_i32 = arith.constant 0 : i32
    %c0_i32_0 = arith.constant 0 : i32
    %c0_i32_1 = arith.constant 0 : i32
    %c0_i32_2 = arith.constant 0 : i32
    return %c0_i32, %c0_i32_0, %c0_i32_1 : i32, i32, i32
  }
}

module attributes {stable_mosaic.version = 11 : i64} {
  func.func @_matmul_bias_kernel(%arg0: i32, %arg1: i32, %arg2: i32, %arg3: memref<256x256xbf16, #tpu.memory_space<vmem>>, %arg4: memref<256x128xbf16, #tpu.memory_space<vmem>>, %arg5: memref<1x128xf32, #tpu.memory_space<vmem>>, %arg6: memref<256x128xf32, #tpu.memory_space<vmem>>, %arg7: memref<256x128xf32, #tpu.memory_space<vmem>>) attributes {dimension_semantics = [#tpu.dimension_semantics<parallel>, #tpu.dimension_semantics<parallel>, #tpu.dimension_semantics<arbitrary>], iteration_bounds = array<i64: 1, 1, 1>, scalar_prefetch = 0 : i64, scratch_operands = 1 : i64, tpu.core_type = #tpu.core_type<tc>, window_params = [{transform_indices = @transform_0, window_bounds = array<i64: 256, 256>}, {transform_indices = @transform_1, window_bounds = array<i64: 256, 128>}, {transform_indices = @transform_2, window_bounds = array<i64: 1, 128>}, {transform_indices = @transform_3, window_bounds = array<i64: 256, 128>}]} {
    %c0_i32 = arith.constant 0 : i32
    %0 = arith.cmpi eq, %arg2, %c0_i32 : i32
    %1 = arith.extui %0 : i1 to i32
    %c0_i32_0 = arith.constant 0 : i32
    %2 = arith.cmpi ne, %1, %c0_i32_0 : i32
    scf.if %2 {
      %cst_14 = arith.constant 0.000000e+00 : f32
      %14 = vector.broadcast %cst_14 : f32 to vector<256x128xf32>
      %c0_15 = arith.constant 0 : index
      %c0_16 = arith.constant 0 : index
      %15 = vector.load %arg7[%c0_15, %c0_16] : memref<256x128xf32, #tpu.memory_space<vmem>>, vector<256x128xf32>
      tpu.vector_store %arg7[%c0_15, %c0_16], %14 {strides = array<i32>} : memref<256x128xf32, #tpu.memory_space<vmem>>, vector<256x128xf32>,
    } else {
    }
    %c0 = arith.constant 0 : index
    %c0_1 = arith.constant 0 : index
    %3 = vector.load %arg7[%c0, %c0_1] : memref<256x128xf32, #tpu.memory_space<vmem>>, vector<256x128xf32>
    %c0_2 = arith.constant 0 : index
    %c0_3 = arith.constant 0 : index
    %4 = vector.load %arg3[%c0_2, %c0_3] : memref<256x256xbf16, #tpu.memory_space<vmem>>, vector<256x256xbf16>
    %c0_4 = arith.constant 0 : index
    %c0_5 = arith.constant 0 : index
    %5 = vector.load %arg4[%c0_4, %c0_5] : memref<256x128xbf16, #tpu.memory_space<vmem>>, vector<256x128xbf16>
    %cst = arith.constant dense<0.000000e+00> : vector<256x128xf32>
    %6 = tpu.matmul %4, %5, %cst {dimension_numbers = #tpu.dot_dimension_numbers<[1], [0], [0], [1], [0, 0, 1, 1], [], []>} : vector<256x256xbf16>, vector<256x128xbf16>, vector<256x128xf32> -> vector<256x128xf32>
    %7 = arith.addf %3, %6 : vector<256x128xf32>
    %c0_6 = arith.constant 0 : index
    %c0_7 = arith.constant 0 : index
    %8 = vector.load %arg7[%c0_6, %c0_7] : memref<256x128xf32, #tpu.memory_space<vmem>>, vector<256x128xf32>
    tpu.vector_store %arg7[%c0_6, %c0_7], %7 {strides = array<i32>} : memref<256x128xf32, #tpu.memory_space<vmem>>, vector<256x128xf32>,
    %c0_8 = arith.constant 0 : index
    %c0_9 = arith.constant 0 : index
    %9 = vector.load %arg7[%c0_8, %c0_9] : memref<256x128xf32, #tpu.memory_space<vmem>>, vector<256x128xf32>
    %c0_10 = arith.constant 0 : index
    %c0_11 = arith.constant 0 : index
    %10 = vector.load %arg5[%c0_10, %c0_11] : memref<1x128xf32, #tpu.memory_space<vmem>>, vector<1x128xf32>
    %11 = vector.broadcast %10 : vector<1x128xf32> to vector<256x128xf32>
    %12 = arith.addf %9, %11 : vector<256x128xf32>
    %c0_12 = arith.constant 0 : index
    %c0_13 = arith.constant 0 : index
    %13 = vector.load %arg6[%c0_12, %c0_13] : memref<256x128xf32, #tpu.memory_space<vmem>>, vector<256x128xf32>
    tpu.vector_store %arg6[%c0_12, %c0_13], %12 {strides = array<i32>} : memref<256x128xf32, #tpu.memory_space<vmem>>, vector<256x128xf32>,
    return
  }
  func.func @transform_0(%arg0: i32, %arg1: i32, %arg2: i32) -> (i32, i32) {
    %c0_i32 = arith.constant 0 : i32
    return %arg0, %arg2 : i32, i32
  }
  func.func @transform_1(%arg0: i32, %arg1: i32, %arg2: i32) -> (i32, i32) {
    %c0_i32 = arith.constant 0 : i32
    return %arg2, %arg1 : i32, i32
  }
  func.func @transform_2(%arg0: i32, %arg1: i32, %arg2: i32) -> (i32, i32) {
    %c0_i32 = arith.constant 0 : i32
    %c0_i32_0 = arith.constant 0 : i32
    return %c0_i32, %arg1 : i32, i32
  }
  func.func @transform_3(%arg0: i32, %arg1: i32, %arg2: i32) -> (i32, i32) {
    %c0_i32 = arith.constant 0 : i32
    return %arg0, %arg1 : i32, i32
  }
}

module attributes {stable_mosaic.version = 11 : i64} {
  func.func @_matmul_bias_kernel(%arg0: i32, %arg1: i32, %arg2: i32, %arg3: memref<32x128xbf16, #tpu.memory_space<vmem>>, %arg4: memref<128x128xbf16, #tpu.memory_space<vmem>>, %arg5: memref<1x128xf32, #tpu.memory_space<vmem>>, %arg6: memref<32x128xf32, #tpu.memory_space<vmem>>, %arg7: memref<32x128xf32, #tpu.memory_space<vmem>>) attributes {dimension_semantics = [#tpu.dimension_semantics<parallel>, #tpu.dimension_semantics<parallel>, #tpu.dimension_semantics<arbitrary>], iteration_bounds = array<i64: 1, 1, 1>, scalar_prefetch = 0 : i64, scratch_operands = 1 : i64, tpu.core_type = #tpu.core_type<tc>, window_params = [{transform_indices = @transform_0, window_bounds = array<i64: 32, 128>}, {transform_indices = @transform_1, window_bounds = array<i64: 128, 128>}, {transform_indices = @transform_2, window_bounds = array<i64: 1, 128>}, {transform_indices = @transform_3, window_bounds = array<i64: 32, 128>}]} {
    %c0_i32 = arith.constant 0 : i32
    %0 = arith.cmpi eq, %arg2, %c0_i32 : i32
    %1 = arith.extui %0 : i1 to i32
    %c0_i32_0 = arith.constant 0 : i32
    %2 = arith.cmpi ne, %1, %c0_i32_0 : i32
    scf.if %2 {
      %cst_14 = arith.constant 0.000000e+00 : f32
      %14 = vector.broadcast %cst_14 : f32 to vector<32x128xf32>
      %c0_15 = arith.constant 0 : index
      %c0_16 = arith.constant 0 : index
      %15 = vector.load %arg7[%c0_15, %c0_16] : memref<32x128xf32, #tpu.memory_space<vmem>>, vector<32x128xf32>
      tpu.vector_store %arg7[%c0_15, %c0_16], %14 {strides = array<i32>} : memref<32x128xf32, #tpu.memory_space<vmem>>, vector<32x128xf32>,
    } else {
    }
    %c0 = arith.constant 0 : index
    %c0_1 = arith.constant 0 : index
    %3 = vector.load %arg7[%c0, %c0_1] : memref<32x128xf32, #tpu.memory_space<vmem>>, vector<32x128xf32>
    %c0_2 = arith.constant 0 : index
    %c0_3 = arith.constant 0 : index
    %4 = vector.load %arg3[%c0_2, %c0_3] : memref<32x128xbf16, #tpu.memory_space<vmem>>, vector<32x128xbf16>
    %c0_4 = arith.constant 0 : index
    %c0_5 = arith.constant 0 : index
    %5 = vector.load %arg4[%c0_4, %c0_5] : memref<128x128xbf16, #tpu.memory_space<vmem>>, vector<128x128xbf16>
    %cst = arith.constant dense<0.000000e+00> : vector<32x128xf32>
    %6 = tpu.matmul %4, %5, %cst {dimension_numbers = #tpu.dot_dimension_numbers<[1], [0], [0], [1], [0, 0, 1, 1], [], []>} : vector<32x128xbf16>, vector<128x128xbf16>, vector<32x128xf32> -> vector<32x128xf32>
    %7 = arith.addf %3, %6 : vector<32x128xf32>
    %c0_6 = arith.constant 0 : index
    %c0_7 = arith.constant 0 : index
    %8 = vector.load %arg7[%c0_6, %c0_7] : memref<32x128xf32, #tpu.memory_space<vmem>>, vector<32x128xf32>
    tpu.vector_store %arg7[%c0_6, %c0_7], %7 {strides = array<i32>} : memref<32x128xf32, #tpu.memory_space<vmem>>, vector<32x128xf32>,
    %c0_8 = arith.constant 0 : index
    %c0_9 = arith.constant 0 : index
    %9 = vector.load %arg7[%c0_8, %c0_9] : memref<32x128xf32, #tpu.memory_space<vmem>>, vector<32x128xf32>
    %c0_10 = arith.constant 0 : index
    %c0_11 = arith.constant 0 : index
    %10 = vector.load %arg5[%c0_10, %c0_11] : memref<1x128xf32, #tpu.memory_space<vmem>>, vector<1x128xf32>
    %11 = vector.broadcast %10 : vector<1x128xf32> to vector<32x128xf32>
    %12 = arith.addf %9, %11 : vector<32x128xf32>
    %c0_12 = arith.constant 0 : index
    %c0_13 = arith.constant 0 : index
    %13 = vector.load %arg6[%c0_12, %c0_13] : memref<32x128xf32, #tpu.memory_space<vmem>>, vector<32x128xf32>
    tpu.vector_store %arg6[%c0_12, %c0_13], %12 {strides = array<i32>} : memref<32x128xf32, #tpu.memory_space<vmem>>, vector<32x128xf32>,
    return
  }
  func.func @transform_0(%arg0: i32, %arg1: i32, %arg2: i32) -> (i32, i32) {
    %c0_i32 = arith.constant 0 : i32
    return %arg0, %arg2 : i32, i32
  }
  func.func @transform_1(%arg0: i32, %arg1: i32, %arg2: i32) -> (i32, i32) {
    %c0_i32 = arith.constant 0 : i32
    return %arg2, %arg1 : i32, i32
  }
  func.func @transform_2(%arg0: i32, %arg1: i32, %arg2: i32) -> (i32, i32) {
    %c0_i32 = arith.constant 0 : i32
    %c0_i32_0 = arith.constant 0 : i32
    return %c0_i32, %arg1 : i32, i32
  }
  func.func @transform_3(%arg0: i32, %arg1: i32, %arg2: i32) -> (i32, i32) {
    %c0_i32 = arith.constant 0 : i32
    return %arg0, %arg1 : i32, i32
  }
}

module attributes {stable_mosaic.version = 11 : i64} {
  func.func @_matmul_bias_kernel(%arg0: i32, %arg1: i32, %arg2: i32, %arg3: memref<32x256xbf16, #tpu.memory_space<vmem>>, %arg4: memref<256x128xbf16, #tpu.memory_space<vmem>>, %arg5: memref<1x128xf32, #tpu.memory_space<vmem>>, %arg6: memref<32x128xf32, #tpu.memory_space<vmem>>, %arg7: memref<32x128xf32, #tpu.memory_space<vmem>>) attributes {dimension_semantics = [#tpu.dimension_semantics<parallel>, #tpu.dimension_semantics<parallel>, #tpu.dimension_semantics<arbitrary>], iteration_bounds = array<i64: 1, 1, 1>, scalar_prefetch = 0 : i64, scratch_operands = 1 : i64, tpu.core_type = #tpu.core_type<tc>, window_params = [{transform_indices = @transform_0, window_bounds = array<i64: 32, 256>}, {transform_indices = @transform_1, window_bounds = array<i64: 256, 128>}, {transform_indices = @transform_2, window_bounds = array<i64: 1, 128>}, {transform_indices = @transform_3, window_bounds = array<i64: 32, 128>}]} {
    %c0_i32 = arith.constant 0 : i32
    %0 = arith.cmpi eq, %arg2, %c0_i32 : i32
    %1 = arith.extui %0 : i1 to i32
    %c0_i32_0 = arith.constant 0 : i32
    %2 = arith.cmpi ne, %1, %c0_i32_0 : i32
    scf.if %2 {
      %cst_14 = arith.constant 0.000000e+00 : f32
      %14 = vector.broadcast %cst_14 : f32 to vector<32x128xf32>
      %c0_15 = arith.constant 0 : index
      %c0_16 = arith.constant 0 : index
      %15 = vector.load %arg7[%c0_15, %c0_16] : memref<32x128xf32, #tpu.memory_space<vmem>>, vector<32x128xf32>
      tpu.vector_store %arg7[%c0_15, %c0_16], %14 {strides = array<i32>} : memref<32x128xf32, #tpu.memory_space<vmem>>, vector<32x128xf32>,
    } else {
    }
    %c0 = arith.constant 0 : index
    %c0_1 = arith.constant 0 : index
    %3 = vector.load %arg7[%c0, %c0_1] : memref<32x128xf32, #tpu.memory_space<vmem>>, vector<32x128xf32>
    %c0_2 = arith.constant 0 : index
    %c0_3 = arith.constant 0 : index
    %4 = vector.load %arg3[%c0_2, %c0_3] : memref<32x256xbf16, #tpu.memory_space<vmem>>, vector<32x256xbf16>
    %c0_4 = arith.constant 0 : index
    %c0_5 = arith.constant 0 : index
    %5 = vector.load %arg4[%c0_4, %c0_5] : memref<256x128xbf16, #tpu.memory_space<vmem>>, vector<256x128xbf16>
    %cst = arith.constant dense<0.000000e+00> : vector<32x128xf32>
    %6 = tpu.matmul %4, %5, %cst {dimension_numbers = #tpu.dot_dimension_numbers<[1], [0], [0], [1], [0, 0, 1, 1], [], []>} : vector<32x256xbf16>, vector<256x128xbf16>, vector<32x128xf32> -> vector<32x128xf32>
    %7 = arith.addf %3, %6 : vector<32x128xf32>
    %c0_6 = arith.constant 0 : index
    %c0_7 = arith.constant 0 : index
    %8 = vector.load %arg7[%c0_6, %c0_7] : memref<32x128xf32, #tpu.memory_space<vmem>>, vector<32x128xf32>
    tpu.vector_store %arg7[%c0_6, %c0_7], %7 {strides = array<i32>} : memref<32x128xf32, #tpu.memory_space<vmem>>, vector<32x128xf32>,
    %c0_8 = arith.constant 0 : index
    %c0_9 = arith.constant 0 : index
    %9 = vector.load %arg7[%c0_8, %c0_9] : memref<32x128xf32, #tpu.memory_space<vmem>>, vector<32x128xf32>
    %c0_10 = arith.constant 0 : index
    %c0_11 = arith.constant 0 : index
    %10 = vector.load %arg5[%c0_10, %c0_11] : memref<1x128xf32, #tpu.memory_space<vmem>>, vector<1x128xf32>
    %11 = vector.broadcast %10 : vector<1x128xf32> to vector<32x128xf32>
    %12 = arith.addf %9, %11 : vector<32x128xf32>
    %c0_12 = arith.constant 0 : index
    %c0_13 = arith.constant 0 : index
    %13 = vector.load %arg6[%c0_12, %c0_13] : memref<32x128xf32, #tpu.memory_space<vmem>>, vector<32x128xf32>
    tpu.vector_store %arg6[%c0_12, %c0_13], %12 {strides = array<i32>} : memref<32x128xf32, #tpu.memory_space<vmem>>, vector<32x128xf32>,
    return
  }
  func.func @transform_0(%arg0: i32, %arg1: i32, %arg2: i32) -> (i32, i32) {
    %c0_i32 = arith.constant 0 : i32
    return %arg0, %arg2 : i32, i32
  }
  func.func @transform_1(%arg0: i32, %arg1: i32, %arg2: i32) -> (i32, i32) {
    %c0_i32 = arith.constant 0 : i32
    return %arg2, %arg1 : i32, i32
  }
  func.func @transform_2(%arg0: i32, %arg1: i32, %arg2: i32) -> (i32, i32) {
    %c0_i32 = arith.constant 0 : i32
    %c0_i32_0 = arith.constant 0 : i32
    return %c0_i32, %arg1 : i32, i32
  }
  func.func @transform_3(%arg0: i32, %arg1: i32, %arg2: i32) -> (i32, i32) {
    %c0_i32 = arith.constant 0 : i32
    return %arg0, %arg1 : i32, i32
  }
}

module attributes {stable_mosaic.version = 11 : i64} {
  func.func @_matmul_bias_kernel(%arg0: i32, %arg1: i32, %arg2: i32, %arg3: memref<40x128xbf16, #tpu.memory_space<vmem>>, %arg4: memref<128x128xbf16, #tpu.memory_space<vmem>>, %arg5: memref<1x128xf32, #tpu.memory_space<vmem>>, %arg6: memref<40x128xf32, #tpu.memory_space<vmem>>, %arg7: memref<40x128xf32, #tpu.memory_space<vmem>>) attributes {dimension_semantics = [#tpu.dimension_semantics<parallel>, #tpu.dimension_semantics<parallel>, #tpu.dimension_semantics<arbitrary>], iteration_bounds = array<i64: 1, 1, 1>, scalar_prefetch = 0 : i64, scratch_operands = 1 : i64, tpu.core_type = #tpu.core_type<tc>, window_params = [{transform_indices = @transform_0, window_bounds = array<i64: 40, 128>}, {transform_indices = @transform_1, window_bounds = array<i64: 128, 128>}, {transform_indices = @transform_2, window_bounds = array<i64: 1, 128>}, {transform_indices = @transform_3, window_bounds = array<i64: 40, 128>}]} {
    %c0_i32 = arith.constant 0 : i32
    %0 = arith.cmpi eq, %arg2, %c0_i32 : i32
    %1 = arith.extui %0 : i1 to i32
    %c0_i32_0 = arith.constant 0 : i32
    %2 = arith.cmpi ne, %1, %c0_i32_0 : i32
    scf.if %2 {
      %cst_14 = arith.constant 0.000000e+00 : f32
      %14 = vector.broadcast %cst_14 : f32 to vector<40x128xf32>
      %c0_15 = arith.constant 0 : index
      %c0_16 = arith.constant 0 : index
      %15 = vector.load %arg7[%c0_15, %c0_16] : memref<40x128xf32, #tpu.memory_space<vmem>>, vector<40x128xf32>
      tpu.vector_store %arg7[%c0_15, %c0_16], %14 {strides = array<i32>} : memref<40x128xf32, #tpu.memory_space<vmem>>, vector<40x128xf32>,
    } else {
    }
    %c0 = arith.constant 0 : index
    %c0_1 = arith.constant 0 : index
    %3 = vector.load %arg7[%c0, %c0_1] : memref<40x128xf32, #tpu.memory_space<vmem>>, vector<40x128xf32>
    %c0_2 = arith.constant 0 : index
    %c0_3 = arith.constant 0 : index
    %4 = vector.load %arg3[%c0_2, %c0_3] : memref<40x128xbf16, #tpu.memory_space<vmem>>, vector<40x128xbf16>
    %c0_4 = arith.constant 0 : index
    %c0_5 = arith.constant 0 : index
    %5 = vector.load %arg4[%c0_4, %c0_5] : memref<128x128xbf16, #tpu.memory_space<vmem>>, vector<128x128xbf16>
    %cst = arith.constant dense<0.000000e+00> : vector<40x128xf32>
    %6 = tpu.matmul %4, %5, %cst {dimension_numbers = #tpu.dot_dimension_numbers<[1], [0], [0], [1], [0, 0, 1, 1], [], []>} : vector<40x128xbf16>, vector<128x128xbf16>, vector<40x128xf32> -> vector<40x128xf32>
    %7 = arith.addf %3, %6 : vector<40x128xf32>
    %c0_6 = arith.constant 0 : index
    %c0_7 = arith.constant 0 : index
    %8 = vector.load %arg7[%c0_6, %c0_7] : memref<40x128xf32, #tpu.memory_space<vmem>>, vector<40x128xf32>
    tpu.vector_store %arg7[%c0_6, %c0_7], %7 {strides = array<i32>} : memref<40x128xf32, #tpu.memory_space<vmem>>, vector<40x128xf32>,
    %c0_8 = arith.constant 0 : index
    %c0_9 = arith.constant 0 : index
    %9 = vector.load %arg7[%c0_8, %c0_9] : memref<40x128xf32, #tpu.memory_space<vmem>>, vector<40x128xf32>
    %c0_10 = arith.constant 0 : index
    %c0_11 = arith.constant 0 : index
    %10 = vector.load %arg5[%c0_10, %c0_11] : memref<1x128xf32, #tpu.memory_space<vmem>>, vector<1x128xf32>
    %11 = vector.broadcast %10 : vector<1x128xf32> to vector<40x128xf32>
    %12 = arith.addf %9, %11 : vector<40x128xf32>
    %c0_12 = arith.constant 0 : index
    %c0_13 = arith.constant 0 : index
    %13 = vector.load %arg6[%c0_12, %c0_13] : memref<40x128xf32, #tpu.memory_space<vmem>>, vector<40x128xf32>
    tpu.vector_store %arg6[%c0_12, %c0_13], %12 {strides = array<i32>} : memref<40x128xf32, #tpu.memory_space<vmem>>, vector<40x128xf32>,
    return
  }
  func.func @transform_0(%arg0: i32, %arg1: i32, %arg2: i32) -> (i32, i32) {
    %c0_i32 = arith.constant 0 : i32
    return %arg0, %arg2 : i32, i32
  }
  func.func @transform_1(%arg0: i32, %arg1: i32, %arg2: i32) -> (i32, i32) {
    %c0_i32 = arith.constant 0 : i32
    return %arg2, %arg1 : i32, i32
  }
  func.func @transform_2(%arg0: i32, %arg1: i32, %arg2: i32) -> (i32, i32) {
    %c0_i32 = arith.constant 0 : i32
    %c0_i32_0 = arith.constant 0 : i32
    return %c0_i32, %arg1 : i32, i32
  }
  func.func @transform_3(%arg0: i32, %arg1: i32, %arg2: i32) -> (i32, i32) {
    %c0_i32 = arith.constant 0 : i32
    return %arg0, %arg1 : i32, i32
  }
}

module attributes {stable_mosaic.version = 11 : i64} {
  func.func @_matmul_bias_kernel(%arg0: i32, %arg1: i32, %arg2: i32, %arg3: memref<40x256xbf16, #tpu.memory_space<vmem>>, %arg4: memref<256x128xbf16, #tpu.memory_space<vmem>>, %arg5: memref<1x128xf32, #tpu.memory_space<vmem>>, %arg6: memref<40x128xf32, #tpu.memory_space<vmem>>, %arg7: memref<40x128xf32, #tpu.memory_space<vmem>>) attributes {dimension_semantics = [#tpu.dimension_semantics<parallel>, #tpu.dimension_semantics<parallel>, #tpu.dimension_semantics<arbitrary>], iteration_bounds = array<i64: 1, 1, 1>, scalar_prefetch = 0 : i64, scratch_operands = 1 : i64, tpu.core_type = #tpu.core_type<tc>, window_params = [{transform_indices = @transform_0, window_bounds = array<i64: 40, 256>}, {transform_indices = @transform_1, window_bounds = array<i64: 256, 128>}, {transform_indices = @transform_2, window_bounds = array<i64: 1, 128>}, {transform_indices = @transform_3, window_bounds = array<i64: 40, 128>}]} {
    %c0_i32 = arith.constant 0 : i32
    %0 = arith.cmpi eq, %arg2, %c0_i32 : i32
    %1 = arith.extui %0 : i1 to i32
    %c0_i32_0 = arith.constant 0 : i32
    %2 = arith.cmpi ne, %1, %c0_i32_0 : i32
    scf.if %2 {
      %cst_14 = arith.constant 0.000000e+00 : f32
      %14 = vector.broadcast %cst_14 : f32 to vector<40x128xf32>
      %c0_15 = arith.constant 0 : index
      %c0_16 = arith.constant 0 : index
      %15 = vector.load %arg7[%c0_15, %c0_16] : memref<40x128xf32, #tpu.memory_space<vmem>>, vector<40x128xf32>
      tpu.vector_store %arg7[%c0_15, %c0_16], %14 {strides = array<i32>} : memref<40x128xf32, #tpu.memory_space<vmem>>, vector<40x128xf32>,
    } else {
    }
    %c0 = arith.constant 0 : index
    %c0_1 = arith.constant 0 : index
    %3 = vector.load %arg7[%c0, %c0_1] : memref<40x128xf32, #tpu.memory_space<vmem>>, vector<40x128xf32>
    %c0_2 = arith.constant 0 : index
    %c0_3 = arith.constant 0 : index
    %4 = vector.load %arg3[%c0_2, %c0_3] : memref<40x256xbf16, #tpu.memory_space<vmem>>, vector<40x256xbf16>
    %c0_4 = arith.constant 0 : index
    %c0_5 = arith.constant 0 : index
    %5 = vector.load %arg4[%c0_4, %c0_5] : memref<256x128xbf16, #tpu.memory_space<vmem>>, vector<256x128xbf16>
    %cst = arith.constant dense<0.000000e+00> : vector<40x128xf32>
    %6 = tpu.matmul %4, %5, %cst {dimension_numbers = #tpu.dot_dimension_numbers<[1], [0], [0], [1], [0, 0, 1, 1], [], []>} : vector<40x256xbf16>, vector<256x128xbf16>, vector<40x128xf32> -> vector<40x128xf32>
    %7 = arith.addf %3, %6 : vector<40x128xf32>
    %c0_6 = arith.constant 0 : index
    %c0_7 = arith.constant 0 : index
    %8 = vector.load %arg7[%c0_6, %c0_7] : memref<40x128xf32, #tpu.memory_space<vmem>>, vector<40x128xf32>
    tpu.vector_store %arg7[%c0_6, %c0_7], %7 {strides = array<i32>} : memref<40x128xf32, #tpu.memory_space<vmem>>, vector<40x128xf32>,
    %c0_8 = arith.constant 0 : index
    %c0_9 = arith.constant 0 : index
    %9 = vector.load %arg7[%c0_8, %c0_9] : memref<40x128xf32, #tpu.memory_space<vmem>>, vector<40x128xf32>
    %c0_10 = arith.constant 0 : index
    %c0_11 = arith.constant 0 : index
    %10 = vector.load %arg5[%c0_10, %c0_11] : memref<1x128xf32, #tpu.memory_space<vmem>>, vector<1x128xf32>
    %11 = vector.broadcast %10 : vector<1x128xf32> to vector<40x128xf32>
    %12 = arith.addf %9, %11 : vector<40x128xf32>
    %c0_12 = arith.constant 0 : index
    %c0_13 = arith.constant 0 : index
    %13 = vector.load %arg6[%c0_12, %c0_13] : memref<40x128xf32, #tpu.memory_space<vmem>>, vector<40x128xf32>
    tpu.vector_store %arg6[%c0_12, %c0_13], %12 {strides = array<i32>} : memref<40x128xf32, #tpu.memory_space<vmem>>, vector<40x128xf32>,
    return
  }
  func.func @transform_0(%arg0: i32, %arg1: i32, %arg2: i32) -> (i32, i32) {
    %c0_i32 = arith.constant 0 : i32
    return %arg0, %arg2 : i32, i32
  }
  func.func @transform_1(%arg0: i32, %arg1: i32, %arg2: i32) -> (i32, i32) {
    %c0_i32 = arith.constant 0 : i32
    return %arg2, %arg1 : i32, i32
  }
  func.func @transform_2(%arg0: i32, %arg1: i32, %arg2: i32) -> (i32, i32) {
    %c0_i32 = arith.constant 0 : i32
    %c0_i32_0 = arith.constant 0 : i32
    return %c0_i32, %arg1 : i32, i32
  }
  func.func @transform_3(%arg0: i32, %arg1: i32, %arg2: i32) -> (i32, i32) {
    %c0_i32 = arith.constant 0 : i32
    return %arg0, %arg1 : i32, i32
  }
}

module attributes {stable_mosaic.version = 11 : i64} {
  func.func @_dct_block_kernel(%arg0: i32, %arg1: memref<16x16xf32, #tpu.memory_space<vmem>>, %arg2: memref<16x16xf32, #tpu.memory_space<vmem>>, %arg3: memref<1x16xf32, #tpu.memory_space<vmem>>, %arg4: memref<1x16xf32, #tpu.memory_space<vmem>>, %arg5: memref<16x8xf32, #tpu.memory_space<vmem>>, %arg6: memref<8x16xf32, #tpu.memory_space<vmem>>, %arg7: memref<16x16xf32, #tpu.memory_space<vmem>>) attributes {dimension_semantics = [#tpu.dimension_semantics<arbitrary>], iteration_bounds = array<i64: 1>, scalar_prefetch = 0 : i64, scratch_operands = 0 : i64, tpu.core_type = #tpu.core_type<tc>, window_params = [{pipeline_mode = #tpu.pipeline_mode<synchronous>, transform_indices = @transform_0, window_bounds = array<i64: 16, 16>}, {pipeline_mode = #tpu.pipeline_mode<synchronous>, transform_indices = @transform_1, window_bounds = array<i64: 16, 16>}, {pipeline_mode = #tpu.pipeline_mode<synchronous>, transform_indices = @transform_2, window_bounds = array<i64: 1, 16>}, {pipeline_mode = #tpu.pipeline_mode<synchronous>, transform_indices = @transform_3, window_bounds = array<i64: 1, 16>}, {pipeline_mode = #tpu.pipeline_mode<synchronous>, transform_indices = @transform_4, window_bounds = array<i64: 16, 8>}, {pipeline_mode = #tpu.pipeline_mode<synchronous>, transform_indices = @transform_5, window_bounds = array<i64: 8, 16>}, {pipeline_mode = #tpu.pipeline_mode<synchronous>, transform_indices = @transform_6, window_bounds = array<i64: 16, 16>}]} {
    %c0 = arith.constant 0 : index
    %c0_0 = arith.constant 0 : index
    %0 = vector.load %arg1[%c0, %c0_0] : memref<16x16xf32, #tpu.memory_space<vmem>>, vector<16x16xf32>
    %c0_1 = arith.constant 0 : index
    %c0_2 = arith.constant 0 : index
    %1 = vector.load %arg2[%c0_1, %c0_2] : memref<16x16xf32, #tpu.memory_space<vmem>>, vector<16x16xf32>
    %cst = arith.constant dense<0.000000e+00> : vector<16x16xf32>
    %2 = tpu.matmul %0, %1, %cst {dimension_numbers = #tpu.dot_dimension_numbers<[1], [0], [0], [1], [0, 0, 1, 1], [], []>} : vector<16x16xf32>, vector<16x16xf32>, vector<16x16xf32> -> vector<16x16xf32>
    %cst_3 = arith.constant dense<0.000000e+00> : vector<16xf32>
    %3 = vector.multi_reduction <add>, %2, %cst_3 [1] : vector<16x16xf32> to vector<16xf32>
    %4 = vector.shape_cast %3 : vector<16xf32> to vector<16x1xf32>
    %cst_4 = arith.constant 1.600000e+01 : f32
    %5 = vector.broadcast %cst_4 : f32 to vector<16x1xf32>
    %6 = arith.divf %4, %5 : vector<16x1xf32>
    %7 = vector.broadcast %6 : vector<16x1xf32> to vector<16x16xf32>
    %8 = arith.subf %2, %7 : vector<16x16xf32>
    %9 = arith.mulf %8, %8 : vector<16x16xf32>
    %cst_5 = arith.constant dense<0.000000e+00> : vector<16xf32>
    %10 = vector.multi_reduction <add>, %9, %cst_5 [1] : vector<16x16xf32> to vector<16xf32>
    %11 = vector.shape_cast %10 : vector<16xf32> to vector<16x1xf32>
    %cst_6 = arith.constant 1.600000e+01 : f32
    %12 = vector.broadcast %cst_6 : f32 to vector<16x1xf32>
    %13 = arith.divf %11, %12 : vector<16x1xf32>
    %14 = vector.broadcast %6 : vector<16x1xf32> to vector<16x16xf32>
    %15 = arith.subf %2, %14 : vector<16x16xf32>
    %cst_7 = arith.constant 9.99999997E-7 : f32
    %16 = vector.broadcast %cst_7 : f32 to vector<16x1xf32>
    %17 = arith.addf %13, %16 : vector<16x1xf32>
    %18 = math.rsqrt %17 : vector<16x1xf32>
    %19 = vector.broadcast %18 : vector<16x1xf32> to vector<16x16xf32>
    %20 = arith.mulf %15, %19 : vector<16x16xf32>
    %c0_8 = arith.constant 0 : index
    %c0_9 = arith.constant 0 : index
    %21 = vector.load %arg3[%c0_8, %c0_9] : memref<1x16xf32, #tpu.memory_space<vmem>>, vector<1x16xf32>
    %22 = vector.broadcast %21 : vector<1x16xf32> to vector<16x16xf32>
    %23 = arith.mulf %20, %22 : vector<16x16xf32>
    %c0_10 = arith.constant 0 : index
    %c0_11 = arith.constant 0 : index
    %24 = vector.load %arg4[%c0_10, %c0_11] : memref<1x16xf32, #tpu.memory_space<vmem>>, vector<1x16xf32>
    %25 = vector.broadcast %24 : vector<1x16xf32> to vector<16x16xf32>
    %26 = arith.addf %23, %25 : vector<16x16xf32>
    %c0_12 = arith.constant 0 : index
    %c0_13 = arith.constant 0 : index
    %27 = vector.load %arg5[%c0_12, %c0_13] : memref<16x8xf32, #tpu.memory_space<vmem>>, vector<16x8xf32>
    %c0_14 = arith.constant 0 : index
    %c0_15 = arith.constant 0 : index
    %28 = vector.load %arg6[%c0_14, %c0_15] : memref<8x16xf32, #tpu.memory_space<vmem>>, vector<8x16xf32>
    %29 = vector.extract_strided_slice %26 {offsets = [0, 0], sizes = [8, 16], strides = [1, 1]} : vector<16x16xf32> to vector<8x16xf32>
    %cst_16 = arith.constant dense<0.000000e+00> : vector<16x16xf32>
    %30 = tpu.matmul %27, %29, %cst_16 {dimension_numbers = #tpu.dot_dimension_numbers<[1], [0], [0], [1], [0, 0, 1, 1], [], []>} : vector<16x8xf32>, vector<8x16xf32>, vector<16x16xf32> -> vector<16x16xf32>
    %cst_17 = arith.constant 0.000000e+00 : f32
    %31 = vector.broadcast %cst_17 : f32 to vector<16x16xf32>
    %32 = arith.maximumf %30, %31 : vector<16x16xf32>
    %cst_18 = arith.constant dense<0.000000e+00> : vector<8x16xf32>
    %33 = tpu.matmul %28, %32, %cst_18 {dimension_numbers = #tpu.dot_dimension_numbers<[1], [0], [0], [1], [0, 0, 1, 1], [], []>} : vector<8x16xf32>, vector<16x16xf32>, vector<8x16xf32> -> vector<8x16xf32>
    %34 = arith.negf %33 : vector<8x16xf32>
    %35 = math.exp %34 : vector<8x16xf32>
    %cst_19 = arith.constant 1.000000e+00 : f32
    %36 = vector.broadcast %cst_19 : f32 to vector<8x16xf32>
    %37 = arith.addf %36, %35 : vector<8x16xf32>
    %38 = arith.divf %36, %37 : vector<8x16xf32>
    %39 = vector.extract_strided_slice %0 {offsets = [0, 0], sizes = [8, 16], strides = [1, 1]} : vector<16x16xf32> to vector<8x16xf32>
    %40 = arith.mulf %39, %38 : vector<8x16xf32>
    %c0_20 = arith.constant 0 : index
    %c0_21 = arith.constant 0 : index
    %41 = vector.load %arg7[%c0_20, %c0_21] : memref<16x16xf32, #tpu.memory_space<vmem>>, vector<8x16xf32>
    tpu.vector_store %arg7[%c0_20, %c0_21], %40 {strides = array<i32>} : memref<16x16xf32, #tpu.memory_space<vmem>>, vector<8x16xf32>,
    %42 = vector.extract_strided_slice %26 {offsets = [8, 0], sizes = [8, 16], strides = [1, 1]} : vector<16x16xf32> to vector<8x16xf32>
    %cst_22 = arith.constant dense<0.000000e+00> : vector<16x16xf32>
    %43 = tpu.matmul %27, %42, %cst_22 {dimension_numbers = #tpu.dot_dimension_numbers<[1], [0], [0], [1], [0, 0, 1, 1], [], []>} : vector<16x8xf32>, vector<8x16xf32>, vector<16x16xf32> -> vector<16x16xf32>
    %cst_23 = arith.constant 0.000000e+00 : f32
    %44 = vector.broadcast %cst_23 : f32 to vector<16x16xf32>
    %45 = arith.maximumf %43, %44 : vector<16x16xf32>
    %cst_24 = arith.constant dense<0.000000e+00> : vector<8x16xf32>
    %46 = tpu.matmul %28, %45, %cst_24 {dimension_numbers = #tpu.dot_dimension_numbers<[1], [0], [0], [1], [0, 0, 1, 1], [], []>} : vector<8x16xf32>, vector<16x16xf32>, vector<8x16xf32> -> vector<8x16xf32>
    %47 = arith.negf %46 : vector<8x16xf32>
    %48 = math.exp %47 : vector<8x16xf32>
    %cst_25 = arith.constant 1.000000e+00 : f32
    %49 = vector.broadcast %cst_25 : f32 to vector<8x16xf32>
    %50 = arith.addf %49, %48 : vector<8x16xf32>
    %51 = arith.divf %49, %50 : vector<8x16xf32>
    %52 = vector.extract_strided_slice %0 {offsets = [8, 0], sizes = [8, 16], strides = [1, 1]} : vector<16x16xf32> to vector<8x16xf32>
    %53 = arith.mulf %52, %51 : vector<8x16xf32>
    %c8 = arith.constant 8 : index
    %c0_26 = arith.constant 0 : index
    %54 = vector.load %arg7[%c8, %c0_26] : memref<16x16xf32, #tpu.memory_space<vmem>>, vector<8x16xf32>
    tpu.vector_store %arg7[%c8, %c0_26], %53 {strides = array<i32>} : memref<16x16xf32, #tpu.memory_space<vmem>>, vector<8x16xf32>,
    return
  }
  func.func @transform_0(%arg0: i32) -> (i32, i32) {
    %c0_i32 = arith.constant 0 : i32
    %c0_i32_0 = arith.constant 0 : i32
    %c0_i32_1 = arith.constant 0 : i32
    return %c0_i32, %c0_i32_0 : i32, i32
  }
  func.func @transform_1(%arg0: i32) -> (i32, i32) {
    %c0_i32 = arith.constant 0 : i32
    %c0_i32_0 = arith.constant 0 : i32
    %c0_i32_1 = arith.constant 0 : i32
    return %c0_i32, %c0_i32_0 : i32, i32
  }
  func.func @transform_2(%arg0: i32) -> (i32, i32) {
    %c0_i32 = arith.constant 0 : i32
    %c0_i32_0 = arith.constant 0 : i32
    %c0_i32_1 = arith.constant 0 : i32
    return %c0_i32, %c0_i32_0 : i32, i32
  }
  func.func @transform_3(%arg0: i32) -> (i32, i32) {
    %c0_i32 = arith.constant 0 : i32
    %c0_i32_0 = arith.constant 0 : i32
    %c0_i32_1 = arith.constant 0 : i32
    return %c0_i32, %c0_i32_0 : i32, i32
  }
  func.func @transform_4(%arg0: i32) -> (i32, i32) {
    %c0_i32 = arith.constant 0 : i32
    %c0_i32_0 = arith.constant 0 : i32
    %c0_i32_1 = arith.constant 0 : i32
    return %c0_i32, %c0_i32_0 : i32, i32
  }
  func.func @transform_5(%arg0: i32) -> (i32, i32) {
    %c0_i32 = arith.constant 0 : i32
    %c0_i32_0 = arith.constant 0 : i32
    %c0_i32_1 = arith.constant 0 : i32
    return %c0_i32, %c0_i32_0 : i32, i32
  }
  func.func @transform_6(%arg0: i32) -> (i32, i32) {
    %c0_i32 = arith.constant 0 : i32
    %c0_i32_0 = arith.constant 0 : i32
    %c0_i32_1 = arith.constant 0 : i32
    return %c0_i32, %c0_i32_0 : i32, i32
  }
}

module attributes {stable_mosaic.version = 11 : i64} {
  func.func @_matmul_bias_kernel(%arg0: i32, %arg1: i32, %arg2: i32, %arg3: memref<16x128xf32, #tpu.memory_space<vmem>>, %arg4: memref<128x128xf32, #tpu.memory_space<vmem>>, %arg5: memref<1x128xf32, #tpu.memory_space<vmem>>, %arg6: memref<16x128xf32, #tpu.memory_space<vmem>>, %arg7: memref<16x128xf32, #tpu.memory_space<vmem>>) attributes {dimension_semantics = [#tpu.dimension_semantics<parallel>, #tpu.dimension_semantics<parallel>, #tpu.dimension_semantics<arbitrary>], iteration_bounds = array<i64: 1, 1, 1>, scalar_prefetch = 0 : i64, scratch_operands = 1 : i64, tpu.core_type = #tpu.core_type<tc>, window_params = [{transform_indices = @transform_0, window_bounds = array<i64: 16, 128>}, {transform_indices = @transform_1, window_bounds = array<i64: 128, 128>}, {transform_indices = @transform_2, window_bounds = array<i64: 1, 128>}, {transform_indices = @transform_3, window_bounds = array<i64: 16, 128>}]} {
    %c0_i32 = arith.constant 0 : i32
    %0 = arith.cmpi eq, %arg2, %c0_i32 : i32
    %1 = arith.extui %0 : i1 to i32
    %c0_i32_0 = arith.constant 0 : i32
    %2 = arith.cmpi ne, %1, %c0_i32_0 : i32
    scf.if %2 {
      %cst_14 = arith.constant 0.000000e+00 : f32
      %14 = vector.broadcast %cst_14 : f32 to vector<16x128xf32>
      %c0_15 = arith.constant 0 : index
      %c0_16 = arith.constant 0 : index
      %15 = vector.load %arg7[%c0_15, %c0_16] : memref<16x128xf32, #tpu.memory_space<vmem>>, vector<16x128xf32>
      tpu.vector_store %arg7[%c0_15, %c0_16], %14 {strides = array<i32>} : memref<16x128xf32, #tpu.memory_space<vmem>>, vector<16x128xf32>,
    } else {
    }
    %c0 = arith.constant 0 : index
    %c0_1 = arith.constant 0 : index
    %3 = vector.load %arg7[%c0, %c0_1] : memref<16x128xf32, #tpu.memory_space<vmem>>, vector<16x128xf32>
    %c0_2 = arith.constant 0 : index
    %c0_3 = arith.constant 0 : index
    %4 = vector.load %arg3[%c0_2, %c0_3] : memref<16x128xf32, #tpu.memory_space<vmem>>, vector<16x128xf32>
    %c0_4 = arith.constant 0 : index
    %c0_5 = arith.constant 0 : index
    %5 = vector.load %arg4[%c0_4, %c0_5] : memref<128x128xf32, #tpu.memory_space<vmem>>, vector<128x128xf32>
    %cst = arith.constant dense<0.000000e+00> : vector<16x128xf32>
    %6 = tpu.matmul %4, %5, %cst {dimension_numbers = #tpu.dot_dimension_numbers<[1], [0], [0], [1], [0, 0, 1, 1], [], []>} : vector<16x128xf32>, vector<128x128xf32>, vector<16x128xf32> -> vector<16x128xf32>
    %7 = arith.addf %3, %6 : vector<16x128xf32>
    %c0_6 = arith.constant 0 : index
    %c0_7 = arith.constant 0 : index
    %8 = vector.load %arg7[%c0_6, %c0_7] : memref<16x128xf32, #tpu.memory_space<vmem>>, vector<16x128xf32>
    tpu.vector_store %arg7[%c0_6, %c0_7], %7 {strides = array<i32>} : memref<16x128xf32, #tpu.memory_space<vmem>>, vector<16x128xf32>,
    %c0_8 = arith.constant 0 : index
    %c0_9 = arith.constant 0 : index
    %9 = vector.load %arg7[%c0_8, %c0_9] : memref<16x128xf32, #tpu.memory_space<vmem>>, vector<16x128xf32>
    %c0_10 = arith.constant 0 : index
    %c0_11 = arith.constant 0 : index
    %10 = vector.load %arg5[%c0_10, %c0_11] : memref<1x128xf32, #tpu.memory_space<vmem>>, vector<1x128xf32>
    %11 = vector.broadcast %10 : vector<1x128xf32> to vector<16x128xf32>
    %12 = arith.addf %9, %11 : vector<16x128xf32>
    %c0_12 = arith.constant 0 : index
    %c0_13 = arith.constant 0 : index
    %13 = vector.load %arg6[%c0_12, %c0_13] : memref<16x128xf32, #tpu.memory_space<vmem>>, vector<16x128xf32>
    tpu.vector_store %arg6[%c0_12, %c0_13], %12 {strides = array<i32>} : memref<16x128xf32, #tpu.memory_space<vmem>>, vector<16x128xf32>,
    return
  }
  func.func @transform_0(%arg0: i32, %arg1: i32, %arg2: i32) -> (i32, i32) {
    %c0_i32 = arith.constant 0 : i32
    return %arg0, %arg2 : i32, i32
  }
  func.func @transform_1(%arg0: i32, %arg1: i32, %arg2: i32) -> (i32, i32) {
    %c0_i32 = arith.constant 0 : i32
    return %arg2, %arg1 : i32, i32
  }
  func.func @transform_2(%arg0: i32, %arg1: i32, %arg2: i32) -> (i32, i32) {
    %c0_i32 = arith.constant 0 : i32
    %c0_i32_0 = arith.constant 0 : i32
    return %c0_i32, %arg1 : i32, i32
  }
  func.func @transform_3(%arg0: i32, %arg1: i32, %arg2: i32) -> (i32, i32) {
    %c0_i32 = arith.constant 0 : i32
    return %arg0, %arg1 : i32, i32
  }
}

</mosaic_0001>

<bundles_post_ra>
// kernel: wavelet_forward.18
= control target key start
LH: loop header
LB: loop body
LE: loop exit
PB: predicated region body
PF: predicated region fallthrough
CT: control target
= control target key end

     0   :  { %11 = vsyncpa [#allocation3], 0  ;;  %s458_s0 = inlined_call_operand.vmem [shape: f32[16,16], index: 0, kind: input, shape index: {}]   ;;  %s459_s1 = inlined_call_operand.vmem [shape: bf16[16,128], index: 1, kind: input, shape index: {}]   ;;  %s460_s2 = inlined_call_operand.hbm [shape: f32[16,9], index: 2, kind: input, shape index: {}]   ;;  %s461_s3 = inlined_call_operand.hbm [shape: f32[16,9], index: 3, kind: input, shape index: {}]   ;;  %s462_s4 = inlined_call_operand.vmem [shape: f32[16,128], index: 4, kind: output, shape index: {0}]   ;;  %s463_s5 = inlined_call_operand.vmem [shape: f32[16,9], index: 5, kind: output, shape index: {1}]  }
   0x1   :  { %12 = vsyncpa [#allocation5], 0  ;;  %s390_s18 = smov [#allocation2]  }
   0x2   :  { %s22_s19 = sshll.u32 %s390_s18, 4  ;;  %s23_s19 = int_to_ptr.vmem [resolvable:$true] %s22_s19 }
   0x3   :  { %s354_s20 = scalar_lea.vmem %s23_s19, 256  ;;  %p359_p1 = scmp.lt.s32.totalorder %s23_s19, %s23_s19 }
   0x4   :  { %p355_p0 = scmp.ne.s32.totalorder %s23_s19, %s354_s20  ;;  %p360_p2 = scmp.lt.s32.totalorder %s354_s20, %s354_s20 }
   0x6   :  { %p361_p3 = por %p360_p2, %p359_p1 }
   0x8   :  { %p362_p4 = pnand %p361_p3, %p355_p0 }
   0xa   :  { %365 = shalt.err (!%p362_p4)
}
   0xb   :  { %s391_s21 = smov 128   ;;  %s392_s22 = smov 8  }
   0xc   :  { %28 = dma.hbm_to_vmem [thread:$0]  %s460_s2, 256, %s23_s19, [#allocation3], %s391_s21, %s391_s21, %s392_s22  }
   0xd   :  { %s393_s25 = smov [#allocation4]  }
   0xe   :  { %s34_s26 = sshll.u32 %s393_s25, 4  ;;  %s35_s26 = int_to_ptr.vmem [resolvable:$true] %s34_s26 }
   0xf   :  { %s374_s27 = scalar_lea.vmem %s35_s26, 256  ;;  %p379_p6 = scmp.lt.s32.totalorder %s35_s26, %s35_s26 }
  0x10   :  { %p375_p5 = scmp.ne.s32.totalorder %s35_s26, %s374_s27  ;;  %p380_p7 = scmp.lt.s32.totalorder %s374_s27, %s374_s27 }
  0x12   :  { %p381_p8 = por %p380_p7, %p379_p6 }
  0x14   :  { %p382_p9 = pnand %p381_p8, %p375_p5 }
  0x16   :  { %385 = shalt.err (!%p382_p9)
}
  0x17   :  { %40 = dma.hbm_to_vmem [thread:$0]  %s461_s3, 256, %s35_s26, [#allocation5], %s391_s21, %s391_s21, %s392_s22  }
  0x18   :  { %386 = dma.done.wait [#allocation3], 256  }
  0x19   :  { %387 = vsyncadd [#allocation3], 4294967040 }
  0x1a   :  { %388 = dma.done.wait [#allocation5], 256  }
  0x1b   :  { %389 = vsyncadd [#allocation5], 4294967040  ;;  %v394_v0 = vmov 0.0   ;;  %vm395_vm0 = vmmov 0   ;;  %vm59_vm1 = vcmask 130048   ;;  %v107_v1 = vld [vmem:[#allocation2 + $0x8] sm:$0xff] }
  0x1c   :  { %315 = vmatprep.subr.bf16.mxu0 %v394_v0  ;;  %317 = vmatprep.mubr.msk.bf16.mxu0 %vm395_vm0, %v394_v0  ;;  %v106_v2 = vld [vmem:[#allocation2] sm:$0xff]  ;;  %v49_v4 = vld [vmem:[%s458_s0 + $0x8] sm:$0xff]  ;;  %v190_v5 = vld [vmem:[#allocation4 + $0x8] sm:$0xff]  ;;  %vm286_vm3 = vcmask 72704  }
  0x1d   :  { %v48_v3 = vld [vmem:[%s458_s0] sm:$0xff]  ;;  %321 = vmatprep.subr.mxu1 %v107_v1  ;;  %v189_v8 = vld [vmem:[#allocation4] sm:$0xff] }
  0x1e   :  { %325 = vmatprep.mubr.msk.f32.mxu1 %vm59_vm1, %v48_v3  ;;  %322 = vmatpush3.msra.mxu1 %v107_v1  ;;  %v341_v6 = vld [vmem:[%s459_s1] sm:$0xff]   ;;  %v50_v7 = vpack.c.bf16 %v49_v4, %v48_v3 }
  0x1f   :  { %323 = vmatprep.subr.mxu1 %v106_v2  ;;  %316 = vmatpush3.bf16.msra.mxu0 %v341_v6 }
  0x20   :  { %324 = vmatpush3.msra.mxu1 %v106_v2 }
  0x21   :  { %326 = vmatmul.mubr.msk.f32.vlgmr.msra.gmra.mxu1 %vm59_vm1, %v49_v4  ;;  %328 = vmatprep.subr.mxu1 %v190_v5 }
  0x22   :  { %329 = vmatpush3.msra.mxu1 %v190_v5  ;;  %332 = vmatprep.mubr.msk.f32.mxu1 %vm59_vm1, %v48_v3 }
  0x23   :  { %330 = vmatprep.subr.mxu1 %v189_v8  ;;  %318 = vmatmul.mubr.msk.bf16.vlgmr.msra.gmra.mxu0 %vm59_vm1, %v50_v7 }
  0x24   :  { %331 = vmatpush3.msra.mxu1 %v189_v8 }
  0x25   :  { %333 = vmatmul.mubr.msk.f32.vlgmr.msra.gmra.mxu1 %vm59_vm1, %v49_v4 }
  0xe1   :  { %v327_v9 = vpop.f32.mrf.mxu1 }
  0xe2   :  { %v267_v14 = vmul.f32 %v327_v9, %v327_v9 }
  0xe3   :  { %v180_v10 = vpop.f32.mrf.mxu1  ;;  %v97_v11 = vpop.f32.mrf.mxu0 }
  0xe4   :  { %104 = vst [vmem:[%s462_s4] sm:$0xff] %v97_v11  ;;  %v266_v20 = vmul.f32 %v180_v10, %v180_v10 }
  0xe5   :  { %v334_v12 = vpop.f32.mrf.mxu1  ;;  %v319_v13 = vpop.f32.mrf.mxu0 }
  0xe6   :  { %v269_v15 = vmul.f32 %v334_v12, %v334_v12 }
  0xe7   :  { %v257_v16 = vpop.f32.mrf.mxu1  ;;  %v100_v17 = vpop.f32.mrf.mxu0 }
  0xe8   :  { %v271_v18 = vadd.f32 %v269_v15, %v267_v14  ;;  %v268_v19 = vmul.f32 %v257_v16, %v257_v16  ;;  %105 = vst [vmem:[%s462_s4 + $0x8] sm:$0xff] %v100_v17 }
  0xe9   :  { %v320_v21 = vpop.f32.mrf.mxu0 }
  0xea   :  { %342 = vrsqrt.f32 %v271_v18  ;;  %v270_v22 = vadd.f32 %v268_v19, %v266_v20  ;;  %vm281_vm2 = vcmp.eq.f32.partialorder %v271_v18, inf  ;;  %v284_v25 = vand.u32 2147483648, %v271_v18 }
  0xeb   :  { %vm283_vm4 = vcmp.eq.f32.partialorder %v271_v18, 0.0 }
  0xec   :  { %344 = vrsqrt.f32 %v270_v22  ;;  %vm274_vm5 = vcmp.eq.f32.partialorder %v270_v22, inf  ;;  %v277_v30 = vand.u32 2147483648, %v270_v22  ;;  %vm276_vm6 = vcmp.eq.f32.partialorder %v270_v22, 0.0 }
  0xf7   :  { %v343_v23 = vpop.eup %342 }
  0xf8   :  { %v280_v24 = vmul.f32 %v343_v23, %v271_v18 }
  0xf9   :  { %v345_v26 = vpop.eup %344 }
  0xfa   :  { %v282_v27 = vsel %vm281_vm2, %v271_v18, %v280_v24  ;;  %v273_v29 = vmul.f32 %v345_v26, %v270_v22 }
  0xfb   :  { %v285_v28 = vsel %vm283_vm4, %v284_v25, %v282_v27 }
  0xfc   :  { %288 = vst.msk [vmem:[%s463_s5 + $0x8] sm:$0xff] %vm286_vm3, %v285_v28  ;;  %v275_v31 = vsel %vm274_vm5, %v270_v22, %v273_v29 }
  0xfd   :  { %v278_v32 = vsel %vm276_vm6, %v277_v30, %v275_v31 }
  0xfe   :  { %287 = vst.msk [vmem:[%s463_s5] sm:$0xff] %vm286_vm3, %v278_v32 }
  0xff   :  { %297 = vsyncpa [#allocation3], 1 }
 0x100   :  { %298 = vsyncpa [#allocation5], 1 }

// kernel: wavelet_forward.31
= control target key start
LH: loop header
LB: loop body
LE: loop exit
PB: predicated region body
PF: predicated region fallthrough
CT: control target
= control target key end

     0   :  { %s969_s1 = inlined_call_operand.vmem [shape: bf16[128,128], index: 1, kind: input, shape index: {}]   ;;  %s970_s0 = inlined_call_operand.vmem [shape: bf16[256,128], index: 0, kind: input, shape index: {}]   ;;  %s971_s2 = inlined_call_operand.vmem [shape: f32[1,128], index: 2, kind: input, shape index: {}]   ;;  %s972_s3 = inlined_call_operand.vmem [shape: f32[256,128], index: 3, kind: output, shape index: {}]  }
   0x1   :  { %v720_v0 = vld [vmem:[%s969_s1 + $0x38] sm:$0xff]   ;;  %v721_v1 = vld [vmem:[%s969_s1 + $0x30] sm:$0xff]   ;;  %v722_v2 = vld [vmem:[%s969_s1 + $0x28] sm:$0xff]  }
   0x2   :  { %656 = vmatprep.subr.bf16.mxu0 %v720_v0  ;;  %704 = vmatprep.subr.bf16.mxu1 %v720_v0  ;;  %v723_v3 = vld [vmem:[%s969_s1 + $0x20] sm:$0xff]   ;;  %v724_v6 = vld [vmem:[%s969_s1 + $0x18] sm:$0xff]   ;;  %v725_v7 = vld [vmem:[%s969_s1 + $0x10] sm:$0xff]  }
   0x3   :  { %657 = vmatpush3.bf16.msra.mxu0 %v720_v0  ;;  %712 = vmatpush3.bf16.msra.mxu1 %v720_v0  ;;  %v728_v4 = vld [vmem:[%s970_s0] sm:$0xff]   ;;  %v726_v8 = vld [vmem:[%s969_s1 + $0x8] sm:$0xff]   ;;  %v732_v12 = vld [vmem:[%s970_s0 + $0x10] sm:$0xff]  }
   0x4   :  { %658 = vmatprep.subr.bf16.mxu0 %v721_v1  ;;  %705 = vmatprep.subr.bf16.mxu1 %v721_v1  ;;  %v729_v5 = vld [vmem:[%s970_s0 + $0x40] sm:$0xff]   ;;  %v730_v10 = vld [vmem:[%s970_s0 + $0x8] sm:$0xff]   ;;  %v733_v13 = vld [vmem:[%s970_s0 + $0x50] sm:$0xff]  }
   0x5   :  { %672 = vmatprep.mubr.bf16.mxu0 %v728_v4  ;;  %688 = vmatprep.mubr.bf16.mxu1 %v729_v5  ;;  %v727_v9 = vld [vmem:[%s969_s1] sm:$0xff]   ;;  %v731_v11 = vld [vmem:[%s970_s0 + $0x48] sm:$0xff]   ;;  %v734_v14 = vld [vmem:[%s970_s0 + $0x18] sm:$0xff]  }
   0x6   :  { %v735_v15 = vld [vmem:[%s970_s0 + $0x58] sm:$0xff]   ;;  %v736_v16 = vld [vmem:[%s970_s0 + $0x20] sm:$0xff]   ;;  %v738_v18 = vld [vmem:[%s970_s0 + $0x28] sm:$0xff]  }
   0x7   :  { %659 = vmatpush3.bf16.msra.mxu0 %v721_v1  ;;  %713 = vmatpush3.bf16.msra.mxu1 %v721_v1  ;;  %v737_v17 = vld [vmem:[%s970_s0 + $0x60] sm:$0xff]   ;;  %v739_v19 = vld [vmem:[%s970_s0 + $0x68] sm:$0xff]   ;;  %v740_v20 = vld [vmem:[%s970_s0 + $0x30] sm:$0xff]  }
   0x8   :  { %660 = vmatprep.subr.bf16.mxu0 %v722_v2  ;;  %706 = vmatprep.subr.bf16.mxu1 %v722_v2  ;;  %v741_v21 = vld [vmem:[%s970_s0 + $0x70] sm:$0xff]   ;;  %v742_v22 = vld [vmem:[%s970_s0 + $0x38] sm:$0xff]   ;;  %v839_v24 = vld [vmem:[%s971_s2] ss:$0 sm:$0xff] }
   0x9   :  { %v743_v23 = vld [vmem:[%s970_s0 + $0x78] sm:$0xff]  }
   0xb   :  { %661 = vmatpush3.bf16.msra.mxu0 %v722_v2  ;;  %714 = vmatpush3.bf16.msra.mxu1 %v722_v2 }
   0xc   :  { %662 = vmatprep.subr.bf16.mxu0 %v723_v3  ;;  %707 = vmatprep.subr.bf16.mxu1 %v723_v3 }
   0xf   :  { %663 = vmatpush3.bf16.msra.mxu0 %v723_v3  ;;  %715 = vmatpush3.bf16.msra.mxu1 %v723_v3 }
  0x10   :  { %664 = vmatprep.subr.bf16.mxu0 %v724_v6  ;;  %708 = vmatprep.subr.bf16.mxu1 %v724_v6 }
  0x13   :  { %665 = vmatpush3.bf16.msra.mxu0 %v724_v6  ;;  %716 = vmatpush3.bf16.msra.mxu1 %v724_v6 }
  0x14   :  { %666 = vmatprep.subr.bf16.mxu0 %v725_v7  ;;  %709 = vmatprep.subr.bf16.mxu1 %v725_v7 }
  0x17   :  { %667 = vmatpush3.bf16.msra.mxu0 %v725_v7  ;;  %717 = vmatpush3.bf16.msra.mxu1 %v725_v7 }
  0x18   :  { %668 = vmatprep.subr.bf16.mxu0 %v726_v8  ;;  %710 = vmatprep.subr.bf16.mxu1 %v726_v8 }
  0x1b   :  { %669 = vmatpush3.bf16.msra.mxu0 %v726_v8  ;;  %718 = vmatpush3.bf16.msra.mxu1 %v726_v8 }
  0x1c   :  { %670 = vmatprep.subr.bf16.mxu0 %v727_v9  ;;  %711 = vmatprep.subr.bf16.mxu1 %v727_v9 }
  0x1f   :  { %671 = vmatpush3.bf16.msra.mxu0 %v727_v9  ;;  %719 = vmatpush3.bf16.msra.mxu1 %v727_v9 }
  0x22   :  { %673 = vmatmul.mubr.bf16.vlgmr.msra.gmra.mxu0 %v730_v10  ;;  %689 = vmatmul.mubr.bf16.vlgmr.msra.gmra.mxu1 %v731_v11 }
  0x23   :  { %676 = vmatprep.mubr.bf16.mxu0 %v732_v12  ;;  %692 = vmatprep.mubr.bf16.mxu1 %v733_v13 }
  0x2a   :  { %677 = vmatmul.mubr.bf16.gmra.mxu0 %v734_v14  ;;  %693 = vmatmul.mubr.bf16.gmra.mxu1 %v735_v15 }
  0x2b   :  { %680 = vmatprep.mubr.bf16.mxu0 %v736_v16  ;;  %696 = vmatprep.mubr.bf16.mxu1 %v737_v17 }
  0x32   :  { %681 = vmatmul.mubr.bf16.gmra.mxu0 %v738_v18  ;;  %697 = vmatmul.mubr.bf16.gmra.mxu1 %v739_v19 }
  0x33   :  { %684 = vmatprep.mubr.bf16.mxu0 %v740_v20  ;;  %700 = vmatprep.mubr.bf16.mxu1 %v741_v21 }
  0x3a   :  { %685 = vmatmul.mubr.bf16.gmra.mxu0 %v742_v22  ;;  %701 = vmatmul.mubr.bf16.gmra.mxu1 %v743_v23 }
  0xe2   :  { %v674_v25 = vpop.f32.mrf.mxu0  ;;  %v690_v26 = vpop.f32.mrf.mxu1 }
  0xe3   :  { %v541_v27 = vadd.f32 %v674_v25, %v839_v24  ;;  %v557_v28 = vadd.f32 %v690_v26, %v839_v24 }
  0xe4   :  { %v309_v29 = vpop.f32.mrf.mxu0  ;;  %v373_v30 = vpop.f32.mrf.mxu1 }
  0xe5   :  { %573 = vst [vmem:[%s972_s3 + $0x10] sm:$0xff] %v541_v27  ;;  %589 = vst [vmem:[%s972_s3 + $0x90] sm:$0xff] %v557_v28  ;;  %v539_v31 = vadd.f32 %v839_v24, %v309_v29  ;;  %v555_v32 = vadd.f32 %v839_v24, %v373_v30 }
  0xe6   :  { %v675_v33 = vpop.f32.mrf.mxu0  ;;  %v691_v34 = vpop.f32.mrf.mxu1 }
  0xe7   :  { %571 = vst [vmem:[%s972_s3] sm:$0xff] %v539_v31  ;;  %587 = vst [vmem:[%s972_s3 + $0x80] sm:$0xff] %v555_v32  ;;  %v542_v35 = vadd.f32 %v675_v33, %v839_v24  ;;  %v558_v36 = vadd.f32 %v691_v34, %v839_v24 }
  0xe8   :  { %v312_v37 = vpop.f32.mrf.mxu0  ;;  %v376_v38 = vpop.f32.mrf.mxu1 }
  0xe9   :  { %574 = vst [vmem:[%s972_s3 + $0x18] sm:$0xff] %v542_v35  ;;  %590 = vst [vmem:[%s972_s3 + $0x98] sm:$0xff] %v558_v36  ;;  %v540_v39 = vadd.f32 %v839_v24, %v312_v37  ;;  %v556_v40 = vadd.f32 %v839_v24, %v376_v38 }
  0xea   :  { %v678_v41 = vpop.f32.mrf.mxu0  ;;  %v694_v42 = vpop.f32.mrf.mxu1 }
  0xeb   :  { %572 = vst [vmem:[%s972_s3 + $0x8] sm:$0xff] %v540_v39  ;;  %588 = vst [vmem:[%s972_s3 + $0x88] sm:$0xff] %v556_v40  ;;  %v545_v43 = vadd.f32 %v678_v41, %v839_v24  ;;  %v561_v44 = vadd.f32 %v694_v42, %v839_v24 }
  0xec   :  { %v325_v45 = vpop.f32.mrf.mxu0  ;;  %v389_v46 = vpop.f32.mrf.mxu1 }
  0xed   :  { %577 = vst [vmem:[%s972_s3 + $0x30] sm:$0xff] %v545_v43  ;;  %593 = vst [vmem:[%s972_s3 + $0xb0] sm:$0xff] %v561_v44  ;;  %v543_v47 = vadd.f32 %v839_v24, %v325_v45  ;;  %v559_v48 = vadd.f32 %v839_v24, %v389_v46 }
  0xee   :  { %v679_v49 = vpop.f32.mrf.mxu0  ;;  %v695_v50 = vpop.f32.mrf.mxu1 }
  0xef   :  { %575 = vst [vmem:[%s972_s3 + $0x20] sm:$0xff] %v543_v47  ;;  %591 = vst [vmem:[%s972_s3 + $0xa0] sm:$0xff] %v559_v48  ;;  %v546_v51 = vadd.f32 %v679_v49, %v839_v24  ;;  %v562_v52 = vadd.f32 %v695_v50, %v839_v24 }
  0xf0   :  { %v328_v53 = vpop.f32.mrf.mxu0  ;;  %v392_v54 = vpop.f32.mrf.mxu1 }
  0xf1   :  { %578 = vst [vmem:[%s972_s3 + $0x38] sm:$0xff] %v546_v51  ;;  %594 = vst [vmem:[%s972_s3 + $0xb8] sm:$0xff] %v562_v52  ;;  %v544_v55 = vadd.f32 %v839_v24, %v328_v53  ;;  %v560_v56 = vadd.f32 %v839_v24, %v392_v54 }
  0xf2   :  { %v682_v57 = vpop.f32.mrf.mxu0  ;;  %v698_v58 = vpop.f32.mrf.mxu1 }
  0xf3   :  { %576 = vst [vmem:[%s972_s3 + $0x28] sm:$0xff] %v544_v55  ;;  %592 = vst [vmem:[%s972_s3 + $0xa8] sm:$0xff] %v560_v56  ;;  %v549_v59 = vadd.f32 %v682_v57, %v839_v24  ;;  %v565_v60 = vadd.f32 %v698_v58, %v839_v24 }
  0xf4   :  { %v341_v61 = vpop.f32.mrf.mxu0  ;;  %v405_v62 = vpop.f32.mrf.mxu1 }
  0xf5   :  { %581 = vst [vmem:[%s972_s3 + $0x50] sm:$0xff] %v549_v59  ;;  %597 = vst [vmem:[%s972_s3 + $0xd0] sm:$0xff] %v565_v60  ;;  %v547_v63 = vadd.f32 %v839_v24, %v341_v61  ;;  %v563_v0 = vadd.f32 %v839_v24, %v405_v62 }
  0xf6   :  { %v683_v1 = vpop.f32.mrf.mxu0  ;;  %v699_v2 = vpop.f32.mrf.mxu1 }
  0xf7   :  { %579 = vst [vmem:[%s972_s3 + $0x40] sm:$0xff] %v547_v63  ;;  %595 = vst [vmem:[%s972_s3 + $0xc0] sm:$0xff] %v563_v0  ;;  %v550_v3 = vadd.f32 %v683_v1, %v839_v24  ;;  %v566_v4 = vadd.f32 %v699_v2, %v839_v24 }
  0xf8   :  { %v344_v5 = vpop.f32.mrf.mxu0  ;;  %v408_v6 = vpop.f32.mrf.mxu1 }
  0xf9   :  { %582 = vst [vmem:[%s972_s3 + $0x58] sm:$0xff] %v550_v3  ;;  %598 = vst [vmem:[%s972_s3 + $0xd8] sm:$0xff] %v566_v4  ;;  %v548_v7 = vadd.f32 %v839_v24, %v344_v5  ;;  %v564_v8 = vadd.f32 %v839_v24, %v408_v6 }
  0xfa   :  { %v686_v9 = vpop.f32.mrf.mxu0  ;;  %v702_v10 = vpop.f32.mrf.mxu1 }
  0xfb   :  { %580 = vst [vmem:[%s972_s3 + $0x48] sm:$0xff] %v548_v7  ;;  %596 = vst [vmem:[%s972_s3 + $0xc8] sm:$0xff] %v564_v8  ;;  %v553_v11 = vadd.f32 %v686_v9, %v839_v24  ;;  %v569_v12 = vadd.f32 %v702_v10, %v839_v24 }
  0xfc   :  { %v357_v13 = vpop.f32.mrf.mxu0  ;;  %v421_v14 = vpop.f32.mrf.mxu1 }
  0xfd   :  { %585 = vst [vmem:[%s972_s3 + $0x70] sm:$0xff] %v553_v11  ;;  %601 = vst [vmem:[%s972_s3 + $0xf0] sm:$0xff] %v569_v12  ;;  %v551_v15 = vadd.f32 %v839_v24, %v357_v13  ;;  %v567_v16 = vadd.f32 %v839_v24, %v421_v14 }
  0xfe   :  { %v687_v17 = vpop.f32.mrf.mxu0  ;;  %v703_v18 = vpop.f32.mrf.mxu1 }
  0xff   :  { %583 = vst [vmem:[%s972_s3 + $0x60] sm:$0xff] %v551_v15  ;;  %599 = vst [vmem:[%s972_s3 + $0xe0] sm:$0xff] %v567_v16  ;;  %v554_v19 = vadd.f32 %v687_v17, %v839_v24  ;;  %v570_v20 = vadd.f32 %v703_v18, %v839_v24 }
 0x100   :  { %v360_v21 = vpop.f32.mrf.mxu0  ;;  %v424_v22 = vpop.f32.mrf.mxu1 }
 0x101   :  { %586 = vst [vmem:[%s972_s3 + $0x78] sm:$0xff] %v554_v19  ;;  %602 = vst [vmem:[%s972_s3 + $0xf8] sm:$0xff] %v570_v20  ;;  %v552_v23 = vadd.f32 %v839_v24, %v360_v21  ;;  %v568_v25 = vadd.f32 %v839_v24, %v424_v22 }
 0x103   :  { %584 = vst [vmem:[%s972_s3 + $0x68] sm:$0xff] %v552_v23  ;;  %600 = vst [vmem:[%s972_s3 + $0xe8] sm:$0xff] %v568_v25 }

// kernel: wavelet_forward.33
= control target key start
LH: loop header
LB: loop body
LE: loop exit
PB: predicated region body
PF: predicated region fallthrough
CT: control target
= control target key end

     0   :  { %v37_v0 = vlaneseq  ;;  %v272_v1 = vmov 1966171168   ;;  %vm138_vm0 = vcmask 64512   ;;  %s491_s1 = inlined_call_operand.vmem [shape: f32[8,8], index: 1, kind: input, shape index: {}]   ;;  %s492_s0 = inlined_call_operand.vmem [shape: f32[2,8,16,8], index: 0, kind: input, shape index: {}]   ;;  %s493_s2 = inlined_call_operand.vmem [shape: f32[1,8], index: 2, kind: input, shape index: {}]   ;;  %s494_s3 = inlined_call_operand.vmem [shape: f32[2,16,8], index: 3, kind: output, shape index: {}]  }
   0x1   :  { %v35_v2 = vunpack.c.l.s4 %v272_v1  ;;  %v14_v3 = vld [vmem:[%s491_s1] sm:$0xff]  ;;  %v18_v20 = vld [vmem:[%s492_s0 + $0x10] sm:$0xff]  ;;  %v17_v39 = vld [vmem:[%s492_s0 + $0x8] sm:$0xff] }
   0x2   :  { %v38_v4 = vshrl.u32 %v37_v0, 7  ;;  %v33_v5 = vcombine.high %v14_v3, %v14_v3  ;;  %v16_v15 = vld [vmem:[%s492_s0] sm:$0xff]  ;;  %v22_v29 = vld [vmem:[%s492_s0 + $0x30] sm:$0xff]  ;;  %v19_v43 = vld [vmem:[%s492_s0 + $0x18] sm:$0xff] }
   0x3   :  { %v36_v6 = vunpack.c.0.s8 %v35_v2  ;;  %v20_v21 = vld [vmem:[%s492_s0 + $0x20] sm:$0xff]  ;;  %v26_v33 = vld [vmem:[%s492_s0 + $0x50] sm:$0xff]  ;;  %v21_v44 = vld [vmem:[%s492_s0 + $0x28] sm:$0xff] }
   0x4   :  { %v84_v10 = vsub.s32 0, %v38_v4  ;;  %v24_v24 = vld [vmem:[%s492_s0 + $0x40] sm:$0xff]  ;;  %v30_v40 = vld [vmem:[%s492_s0 + $0x70] sm:$0xff]  ;;  %v23_v48 = vld [vmem:[%s492_s0 + $0x38] sm:$0xff] }
   0x5   :  { %v39_v7 = vsub.s32 %v36_v6, %v38_v4  ;;  %v28_v34 = vld [vmem:[%s492_s0 + $0x60] sm:$0xff]  ;;  %v25_v52 = vld [vmem:[%s492_s0 + $0x48] sm:$0xff]  ;;  %v27_v53 = vld [vmem:[%s492_s0 + $0x58] sm:$0xff] }
   0x6   :  { %v29_v57 = vld [vmem:[%s492_s0 + $0x68] sm:$0xff]  ;;  %v254_v4 = vld [vmem:[%s492_s0 + $0x90] sm:$0xff]  ;;  %v31_v6 = vld [vmem:[%s492_s0 + $0x78] sm:$0xff] }
   0x7   :  { %v40_v8 = vrot.slane %v14_v3, %v39_v7  ;;  %v47_v9 = vrot.slane %v33_v5, %v39_v7  ;;  %v252_v3 = vld [vmem:[%s492_s0 + $0x80] sm:$0xff] }
   0x9   :  { %v48_v11 = vcombine.high %v40_v8, %v40_v8  ;;  %v49_v12 = vcombine.high %v47_v9, %v47_v9  ;;  %v56_v13 = vrot.slane %v40_v8, %v39_v7  ;;  %v63_v14 = vrot.slane %v47_v9, %v39_v7 }
   0xb   :  { %v70_v16 = vrot.slane %v48_v11, %v39_v7  ;;  %v77_v17 = vrot.slane %v49_v12, %v39_v7  ;;  %v78_v18 = vcombine.high %v56_v13, %v56_v13  ;;  %v79_v19 = vcombine.high %v63_v14, %v63_v14  ;;  %v258_v11 = vld [vmem:[%s492_s0 + $0xb0] sm:$0xff] }
   0xc   :  { %v305_v22 = vrot.slane %v56_v13, %v84_v10  ;;  %v307_v23 = vrot.slane %v63_v14, %v84_v10 }
   0xd   :  { %v80_v25 = vcombine.high %v70_v16, %v70_v16  ;;  %v81_v26 = vcombine.high %v77_v17, %v77_v17  ;;  %v312_v27 = vrot.slane %v70_v16, %v84_v10  ;;  %v314_v28 = vrot.slane %v78_v18, %v84_v10  ;;  %v260_v18 = vld [vmem:[%s492_s0 + $0xc0] sm:$0xff] }
   0xe   :  { %v319_v30 = vrot.slane %v77_v17, %v84_v10  ;;  %v321_v31 = vrot.slane %v79_v19, %v84_v10  ;;  %v122_v32 = vmul.f32 %v305_v22, %v16_v15  ;;  %v130_v41 = vmul.f32 %v307_v23, %v24_v24 }
   0xf   :  { %v330_v35 = vrot.slane %v80_v25, %v84_v10  ;;  %v332_v36 = vrot.slane %v81_v26, %v84_v10  ;;  %v124_v37 = vmul.f32 %v312_v27, %v18_v20  ;;  %v126_v38 = vmul.f32 %v314_v28, %v20_v21  ;;  %v256_v10 = vld [vmem:[%s492_s0 + $0xa0] sm:$0xff]  ;;  %v262_v25 = vld [vmem:[%s492_s0 + $0xd0] sm:$0xff] }
  0x10   :  { %v139_v42 = vsel %vm138_vm0, %v122_v32, 0.0  ;;  %v132_v49 = vmul.f32 %v319_v30, %v26_v33  ;;  %v134_v50 = vmul.f32 %v321_v31, %v28_v34  ;;  %v123_v54 = vmul.f32 %v305_v22, %v17_v39  ;;  %v253_v39 = vld [vmem:[%s492_s0 + $0x88] sm:$0xff] }
  0x11   :  { %v128_v45 = vmul.f32 %v330_v35, %v22_v29  ;;  %v140_v46 = vsel %vm138_vm0, %v124_v37, 0.0  ;;  %v142_v47 = vsel %vm138_vm0, %v126_v38, 0.0  ;;  %v136_v55 = vmul.f32 %v332_v36, %v30_v40  ;;  %v264_v38 = vld [vmem:[%s492_s0 + $0xe0] sm:$0xff] }
  0x12   :  { %v141_v51 = vadd.f32 %v140_v46, %v139_v42  ;;  %v125_v58 = vmul.f32 %v312_v27, %v19_v43  ;;  %v127_v59 = vmul.f32 %v314_v28, %v21_v44  ;;  %v146_v61 = vsel %vm138_vm0, %v130_v41, 0.0  ;;  %v255_v44 = vld [vmem:[%s492_s0 + $0x98] sm:$0xff] }
  0x13   :  { %v144_v56 = vsel %vm138_vm0, %v128_v45, 0.0  ;;  %v129_v62 = vmul.f32 %v330_v35, %v23_v48  ;;  %v131_v63 = vmul.f32 %v307_v23, %v25_v52  ;;  %v133_v0 = vmul.f32 %v319_v30, %v27_v53  ;;  %v251_v52 = vld [vmem:[%s493_s2] ss:$0 sm:$0xff] }
  0x14   :  { %v143_v60 = vadd.f32 %v142_v47, %v141_v51  ;;  %v154_v1 = vsel %vm138_vm0, %v123_v54, 0.0  ;;  %v155_v2 = vsel %vm138_vm0, %v125_v58, 0.0  ;;  %v135_v7 = vmul.f32 %v321_v31, %v29_v57  ;;  %v266_v47 = vld [vmem:[%s492_s0 + $0xf0] sm:$0xff]  ;;  %v259_v51 = vld [vmem:[%s492_s0 + $0xb8] sm:$0xff] }
  0x15   :  { %v156_v8 = vadd.f32 %v155_v2, %v154_v1  ;;  %v157_v9 = vsel %vm138_vm0, %v127_v59, 0.0  ;;  %v148_v12 = vsel %vm138_vm0, %v132_v49, 0.0  ;;  %v150_v13 = vsel %vm138_vm0, %v134_v50, 0.0  ;;  %v257_v50 = vld [vmem:[%s492_s0 + $0xa8] sm:$0xff] }
  0x16   :  { %v145_v5 = vadd.f32 %v144_v56, %v143_v60  ;;  %v152_v14 = vsel %vm138_vm0, %v136_v55, 0.0  ;;  %v159_v15 = vsel %vm138_vm0, %v129_v62, 0.0  ;;  %v196_v19 = vmul.f32 %v252_v3, %v305_v22  ;;  %v261_v60 = vld [vmem:[%s492_s0 + $0xc8] sm:$0xff] }
  0x17   :  { %v158_v17 = vadd.f32 %v157_v9, %v156_v8  ;;  %v198_v20 = vmul.f32 %v254_v4, %v312_v27  ;;  %v137_v21 = vmul.f32 %v332_v36, %v31_v6  ;;  %v161_v24 = vsel %vm138_vm0, %v131_v63, 0.0  ;;  %v265_v9 = vld [vmem:[%s492_s0 + $0xe8] sm:$0xff] }
  0x18   :  { %v147_v16 = vadd.f32 %v146_v61, %v145_v5  ;;  %v200_v26 = vmul.f32 %v256_v10, %v314_v28  ;;  %v202_v29 = vmul.f32 %v258_v11, %v330_v35  ;;  %v163_v34 = vsel %vm138_vm0, %v133_v0, 0.0  ;;  %v263_v5 = vld [vmem:[%s492_s0 + $0xd8] sm:$0xff] }
  0x19   :  { %v160_v33 = vadd.f32 %v159_v15, %v158_v17  ;;  %v165_v37 = vsel %vm138_vm0, %v135_v7, 0.0  ;;  %v204_v40 = vmul.f32 %v260_v18, %v307_v23  ;;  %v212_v41 = vsel %vm138_vm0, %v196_v19, 0.0  ;;  %v267_v15 = vld [vmem:[%s492_s0 + $0xf8] sm:$0xff] }
  0x1a   :  { %v149_v32 = vadd.f32 %v148_v12, %v147_v16  ;;  %v213_v42 = vsel %vm138_vm0, %v198_v20, 0.0  ;;  %v215_v43 = vsel %vm138_vm0, %v200_v26, 0.0  ;;  %v206_v48 = vmul.f32 %v262_v25, %v319_v30 }
  0x1b   :  { %v162_v46 = vadd.f32 %v161_v24, %v160_v33  ;;  %v214_v49 = vadd.f32 %v213_v42, %v212_v41  ;;  %v167_v53 = vsel %vm138_vm0, %v137_v21, 0.0  ;;  %v208_v54 = vmul.f32 %v264_v38, %v321_v31 }
  0x1c   :  { %v151_v45 = vadd.f32 %v150_v13, %v149_v32  ;;  %v217_v55 = vsel %vm138_vm0, %v202_v29, 0.0  ;;  %v197_v56 = vmul.f32 %v253_v39, %v305_v22  ;;  %v199_v61 = vmul.f32 %v255_v44, %v312_v27 }
  0x1d   :  { %v164_v58 = vadd.f32 %v163_v34, %v162_v46  ;;  %v216_v59 = vadd.f32 %v215_v43, %v214_v49  ;;  %v210_v62 = vmul.f32 %v266_v47, %v332_v36  ;;  %v219_v63 = vsel %vm138_vm0, %v204_v40, 0.0 }
  0x1e   :  { %v153_v57 = vadd.f32 %v152_v14, %v151_v45  ;;  %v201_v0 = vmul.f32 %v257_v50, %v314_v28  ;;  %v203_v1 = vmul.f32 %v259_v51, %v330_v35  ;;  %v221_v4 = vsel %vm138_vm0, %v206_v48, 0.0 }
  0x1f   :  { %v166_v3 = vadd.f32 %v165_v37, %v164_v58  ;;  %v218_v22 = vadd.f32 %v217_v55, %v216_v59  ;;  %v205_v6 = vmul.f32 %v261_v60, %v307_v23  ;;  %v227_v27 = vsel %vm138_vm0, %v197_v56, 0.0 }
  0x20   :  { %v175_v2 = vadd.f32 %v251_v52, %v153_v57  ;;  %v228_v7 = vsel %vm138_vm0, %v199_v61, 0.0  ;;  %v230_v8 = vsel %vm138_vm0, %v201_v0, 0.0  ;;  %v223_v23 = vsel %vm138_vm0, %v208_v54, 0.0 }
  0x21   :  { %v168_v28 = vadd.f32 %v167_v53, %v166_v3  ;;  %v220_v35 = vadd.f32 %v219_v63, %v218_v22  ;;  %v229_v10 = vadd.f32 %v228_v7, %v227_v27  ;;  %v207_v11 = vmul.f32 %v263_v5, %v319_v30 }
  0x22   :  { %177 = vst.msk [vmem:[%s494_s3] sm:$0xff] %vm138_vm0, %v175_v2  ;;  %v232_v12 = vsel %vm138_vm0, %v203_v1, 0.0  ;;  %v225_v17 = vsel %vm138_vm0, %v210_v62, 0.0  ;;  %v209_v18 = vmul.f32 %v265_v9, %v321_v31  ;;  %v234_v19 = vsel %vm138_vm0, %v205_v6, 0.0 }
  0x23   :  { %v176_v13 = vadd.f32 %v251_v52, %v168_v28  ;;  %v222_v14 = vadd.f32 %v221_v4, %v220_v35  ;;  %v231_v16 = vadd.f32 %v230_v8, %v229_v10  ;;  %v211_v21 = vmul.f32 %v267_v15, %v332_v36 }
  0x24   :  { %v236_v24 = vsel %vm138_vm0, %v207_v11, 0.0  ;;  %v238_v29 = vsel %vm138_vm0, %v209_v18, 0.0 }
  0x25   :  { %178 = vst.msk [vmem:[%s494_s3 + $0x8] sm:$0xff] %vm138_vm0, %v176_v13  ;;  %v224_v30 = vadd.f32 %v223_v23, %v222_v14  ;;  %v233_v20 = vadd.f32 %v232_v12, %v231_v16  ;;  %v240_v31 = vsel %vm138_vm0, %v211_v21, 0.0 }
  0x27   :  { %v226_v25 = vadd.f32 %v225_v17, %v224_v30  ;;  %v235_v26 = vadd.f32 %v234_v19, %v233_v20 }
  0x29   :  { %v242_v32 = vadd.f32 %v251_v52, %v226_v25  ;;  %v237_v33 = vadd.f32 %v236_v24, %v235_v26 }
  0x2b   :  { %268 = vst.msk [vmem:[%s494_s3 + $0x10] sm:$0xff] %vm138_vm0, %v242_v32  ;;  %v239_v34 = vadd.f32 %v238_v29, %v237_v33 }
  0x2d   :  { %v241_v37 = vadd.f32 %v240_v31, %v239_v34 }
  0x2f   :  { %v243_v38 = vadd.f32 %v251_v52, %v241_v37 }
  0x31   :  { %269 = vst.msk [vmem:[%s494_s3 + $0x18] sm:$0xff] %vm138_vm0, %v243_v38 }

// kernel: wavelet_forward.32
= control target key start
LH: loop header
LB: loop body
LE: loop exit
PB: predicated region body
PF: predicated region fallthrough
CT: control target
= control target key end

     0   :  { %s1273_s1 = inlined_call_operand.vmem [shape: bf16[256,128], index: 1, kind: input, shape index: {}]   ;;  %s1274_s0 = inlined_call_operand.vmem [shape: bf16[256,256], index: 0, kind: input, shape index: {}]   ;;  %s1275_s2 = inlined_call_operand.vmem [shape: f32[1,128], index: 2, kind: input, shape index: {}]   ;;  %s1276_s3 = inlined_call_operand.vmem [shape: f32[256,128], index: 3, kind: output, shape index: {}]  }
   0x1   :  { %v912_v0 = vld [vmem:[%s1273_s1 + $0x78] sm:$0xff]   ;;  %v914_v2 = vld [vmem:[%s1273_s1 + $0x70] sm:$0xff]   ;;  %v916_v4 = vld [vmem:[%s1273_s1 + $0x68] sm:$0xff]  }
   0x2   :  { %v913_v1 = vld [vmem:[%s1273_s1 + $0x38] sm:$0xff]   ;;  %784 = vmatprep.subr.bf16.mxu0 %v912_v0  ;;  %896 = vmatprep.subr.bf16.mxu1 %v912_v0  ;;  %v915_v3 = vld [vmem:[%s1273_s1 + $0x30] sm:$0xff]   ;;  %v917_v5 = vld [vmem:[%s1273_s1 + $0x28] sm:$0xff]  }
   0x3   :  { %785 = vmatpush3.bf16.msra.mxu0 %v913_v1  ;;  %904 = vmatpush3.bf16.msra.mxu1 %v913_v1  ;;  %v918_v6 = vld [vmem:[%s1273_s1 + $0x60] sm:$0xff]   ;;  %v920_v8 = vld [vmem:[%s1273_s1 + $0x58] sm:$0xff]   ;;  %v922_v10 = vld [vmem:[%s1273_s1 + $0x50] sm:$0xff]  }
   0x4   :  { %786 = vmatprep.subr.bf16.mxu0 %v914_v2  ;;  %897 = vmatprep.subr.bf16.mxu1 %v914_v2  ;;  %v919_v7 = vld [vmem:[%s1273_s1 + $0x20] sm:$0xff]   ;;  %v921_v9 = vld [vmem:[%s1273_s1 + $0x18] sm:$0xff]   ;;  %v923_v13 = vld [vmem:[%s1273_s1 + $0x10] sm:$0xff]  }
   0x5   :  { %v930_v11 = vld [vmem:[%s1274_s0 + $0x4] ss:$8 sps:$4 sm:$0xff]   ;;  %v928_v18 = vld [vmem:[%s1274_s0] ss:$8 sps:$4 sm:$0xff]   ;;  %v934_v20 = vld [vmem:[%s1274_s0 + $0x14] ss:$8 sps:$4 sm:$0xff]  }
   0x6   :  { %v933_v12 = vld [vmem:[%s1274_s0 + $0x84] ss:$8 sps:$4 sm:$0xff]   ;;  %435 = vmatprep.mubr.bf16.mxu0 %v930_v11  ;;  %v931_v19 = vld [vmem:[%s1274_s0 + $0x80] ss:$8 sps:$4 sm:$0xff]   ;;  %v936_v21 = vld [vmem:[%s1274_s0 + $0x94] ss:$8 sps:$4 sm:$0xff]  }
   0x7   :  { %787 = vmatpush3.bf16.msra.mxu0 %v915_v3  ;;  %905 = vmatpush3.bf16.msra.mxu1 %v915_v3  ;;  %v924_v14 = vld [vmem:[%s1273_s1 + $0x48] sm:$0xff]   ;;  %v926_v16 = vld [vmem:[%s1273_s1 + $0x40] sm:$0xff]   ;;  %v938_v22 = vld [vmem:[%s1274_s0 + $0x10] ss:$8 sps:$4 sm:$0xff]  }
   0x8   :  { %788 = vmatprep.subr.bf16.mxu0 %v916_v4  ;;  %898 = vmatprep.subr.bf16.mxu1 %v916_v4  ;;  %v925_v15 = vld [vmem:[%s1273_s1 + $0x8] sm:$0xff]   ;;  %v927_v17 = vld [vmem:[%s1273_s1] sm:$0xff]   ;;  %v939_v23 = vld [vmem:[%s1274_s0 + $0x90] ss:$8 sps:$4 sm:$0xff]  }
   0x9   :  { %499 = vmatprep.mubr.bf16.mxu1 %v933_v12  ;;  %v940_v24 = vld [vmem:[%s1274_s0 + $0x24] ss:$8 sps:$4 sm:$0xff]   ;;  %v944_v26 = vld [vmem:[%s1274_s0 + $0x20] ss:$8 sps:$4 sm:$0xff]   ;;  %v946_v28 = vld [vmem:[%s1274_s0 + $0x34] ss:$8 sps:$4 sm:$0xff]  }
   0xa   :  { %v942_v25 = vld [vmem:[%s1274_s0 + $0xa4] ss:$8 sps:$4 sm:$0xff]   ;;  %v945_v27 = vld [vmem:[%s1274_s0 + $0xa0] ss:$8 sps:$4 sm:$0xff]   ;;  %v948_v29 = vld [vmem:[%s1274_s0 + $0xb4] ss:$8 sps:$4 sm:$0xff]  }
   0xb   :  { %789 = vmatpush3.bf16.msra.mxu0 %v917_v5  ;;  %906 = vmatpush3.bf16.msra.mxu1 %v917_v5  ;;  %v950_v30 = vld [vmem:[%s1274_s0 + $0x30] ss:$8 sps:$4 sm:$0xff]   ;;  %v952_v32 = vld [vmem:[%s1274_s0 + $0x44] ss:$8 sps:$4 sm:$0xff]   ;;  %v956_v34 = vld [vmem:[%s1274_s0 + $0x40] ss:$8 sps:$4 sm:$0xff]  }
   0xc   :  { %790 = vmatprep.subr.bf16.mxu0 %v918_v6  ;;  %899 = vmatprep.subr.bf16.mxu1 %v918_v6  ;;  %v951_v31 = vld [vmem:[%s1274_s0 + $0xb0] ss:$8 sps:$4 sm:$0xff]   ;;  %v954_v33 = vld [vmem:[%s1274_s0 + $0xc4] ss:$8 sps:$4 sm:$0xff]   ;;  %v957_v35 = vld [vmem:[%s1274_s0 + $0xc0] ss:$8 sps:$4 sm:$0xff]  }
   0xd   :  { %v958_v36 = vld [vmem:[%s1274_s0 + $0x54] ss:$8 sps:$4 sm:$0xff]   ;;  %v962_v38 = vld [vmem:[%s1274_s0 + $0x50] ss:$8 sps:$4 sm:$0xff]   ;;  %v964_v40 = vld [vmem:[%s1274_s0 + $0x64] ss:$8 sps:$4 sm:$0xff]  }
   0xe   :  { %v960_v37 = vld [vmem:[%s1274_s0 + $0xd4] ss:$8 sps:$4 sm:$0xff]   ;;  %v963_v39 = vld [vmem:[%s1274_s0 + $0xd0] ss:$8 sps:$4 sm:$0xff]   ;;  %v966_v41 = vld [vmem:[%s1274_s0 + $0xe4] ss:$8 sps:$4 sm:$0xff]  }
   0xf   :  { %791 = vmatpush3.bf16.msra.mxu0 %v919_v7  ;;  %907 = vmatpush3.bf16.msra.mxu1 %v919_v7  ;;  %v968_v42 = vld [vmem:[%s1274_s0 + $0x60] ss:$8 sps:$4 sm:$0xff]   ;;  %v970_v44 = vld [vmem:[%s1274_s0 + $0x74] ss:$8 sps:$4 sm:$0xff]   ;;  %v974_v46 = vld [vmem:[%s1274_s0 + $0x70] ss:$8 sps:$4 sm:$0xff]  }
  0x10   :  { %792 = vmatprep.subr.bf16.mxu0 %v920_v8  ;;  %900 = vmatprep.subr.bf16.mxu1 %v920_v8  ;;  %v969_v43 = vld [vmem:[%s1274_s0 + $0xe0] ss:$8 sps:$4 sm:$0xff]   ;;  %v972_v45 = vld [vmem:[%s1274_s0 + $0xf4] ss:$8 sps:$4 sm:$0xff]   ;;  %v975_v47 = vld [vmem:[%s1274_s0 + $0xf0] ss:$8 sps:$4 sm:$0xff]  }
  0x11   :  { %v1143_v51 = vld [vmem:[%s1275_s2] ss:$0 sm:$0xff] }
  0x13   :  { %793 = vmatpush3.bf16.msra.mxu0 %v921_v9  ;;  %908 = vmatpush3.bf16.msra.mxu1 %v921_v9 }
  0x14   :  { %794 = vmatprep.subr.bf16.mxu0 %v922_v10  ;;  %901 = vmatprep.subr.bf16.mxu1 %v922_v10 }
  0x17   :  { %795 = vmatpush3.bf16.msra.mxu0 %v923_v13  ;;  %909 = vmatpush3.bf16.msra.mxu1 %v923_v13 }
  0x18   :  { %796 = vmatprep.subr.bf16.mxu0 %v924_v14  ;;  %902 = vmatprep.subr.bf16.mxu1 %v924_v14 }
  0x1b   :  { %797 = vmatpush3.bf16.msra.mxu0 %v925_v15  ;;  %910 = vmatpush3.bf16.msra.mxu1 %v925_v15 }
  0x1c   :  { %798 = vmatprep.subr.bf16.mxu0 %v926_v16  ;;  %903 = vmatprep.subr.bf16.mxu1 %v926_v16 }
  0x1f   :  { %799 = vmatpush3.bf16.msra.mxu0 %v927_v17  ;;  %911 = vmatpush3.bf16.msra.mxu1 %v927_v17 }
  0x22   :  { %436 = vmatmul.mubr.bf16.vlgmr.msra.gmra.mxu0 %v928_v18  ;;  %500 = vmatmul.mubr.bf16.vlgmr.msra.gmra.mxu1 %v931_v19 }
  0x23   :  { %443 = vmatprep.mubr.bf16.mxu0 %v934_v20  ;;  %507 = vmatprep.mubr.bf16.mxu1 %v936_v21 }
  0x2a   :  { %444 = vmatmul.mubr.bf16.gmra.mxu0 %v938_v22  ;;  %508 = vmatmul.mubr.bf16.gmra.mxu1 %v939_v23 }
  0x2b   :  { %451 = vmatprep.mubr.bf16.mxu0 %v940_v24  ;;  %515 = vmatprep.mubr.bf16.mxu1 %v942_v25 }
  0x32   :  { %452 = vmatmul.mubr.bf16.gmra.mxu0 %v944_v26  ;;  %516 = vmatmul.mubr.bf16.gmra.mxu1 %v945_v27 }
  0x33   :  { %459 = vmatprep.mubr.bf16.mxu0 %v946_v28  ;;  %523 = vmatprep.mubr.bf16.mxu1 %v948_v29 }
  0x3a   :  { %460 = vmatmul.mubr.bf16.gmra.mxu0 %v950_v30  ;;  %524 = vmatmul.mubr.bf16.gmra.mxu1 %v951_v31 }
  0x3b   :  { %467 = vmatprep.mubr.bf16.mxu0 %v952_v32  ;;  %531 = vmatprep.mubr.bf16.mxu1 %v954_v33 }
  0x42   :  { %468 = vmatmul.mubr.bf16.gmra.mxu0 %v956_v34  ;;  %532 = vmatmul.mubr.bf16.gmra.mxu1 %v957_v35 }
  0x43   :  { %475 = vmatprep.mubr.bf16.mxu0 %v958_v36  ;;  %539 = vmatprep.mubr.bf16.mxu1 %v960_v37 }
  0x4a   :  { %476 = vmatmul.mubr.bf16.gmra.mxu0 %v962_v38  ;;  %540 = vmatmul.mubr.bf16.gmra.mxu1 %v963_v39 }
  0x4b   :  { %483 = vmatprep.mubr.bf16.mxu0 %v964_v40  ;;  %547 = vmatprep.mubr.bf16.mxu1 %v966_v41 }
  0x52   :  { %484 = vmatmul.mubr.bf16.gmra.mxu0 %v968_v42  ;;  %548 = vmatmul.mubr.bf16.gmra.mxu1 %v969_v43 }
  0x53   :  { %491 = vmatprep.mubr.bf16.mxu0 %v970_v44  ;;  %555 = vmatprep.mubr.bf16.mxu1 %v972_v45 }
  0x5a   :  { %492 = vmatmul.mubr.bf16.gmra.mxu0 %v974_v46  ;;  %556 = vmatmul.mubr.bf16.gmra.mxu1 %v975_v47 }
  0xe2   :  { %v800_v48 = vpop.f32.mrf.mxu0  ;;  %v848_v49 = vpop.f32.mrf.mxu1 }
  0xe4   :  { %v801_v50 = vpop.f32.mrf.mxu0  ;;  %v849_v52 = vpop.f32.mrf.mxu1 }
  0xe5   :  { %v802_v53 = vadd.f32 %v801_v50, %v800_v48  ;;  %v850_v54 = vadd.f32 %v849_v52, %v848_v49 }
  0xe6   :  { %v803_v55 = vpop.f32.mrf.mxu0  ;;  %v851_v56 = vpop.f32.mrf.mxu1 }
  0xe7   :  { %v667_v57 = vadd.f32 %v802_v53, %v1143_v51  ;;  %v683_v58 = vadd.f32 %v850_v54, %v1143_v51 }
  0xe8   :  { %v804_v59 = vpop.f32.mrf.mxu0  ;;  %v852_v60 = vpop.f32.mrf.mxu1 }
  0xe9   :  { %699 = vst [vmem:[%s1276_s3] sm:$0xff] %v667_v57  ;;  %715 = vst [vmem:[%s1276_s3 + $0x80] sm:$0xff] %v683_v58  ;;  %v805_v61 = vadd.f32 %v804_v59, %v803_v55  ;;  %v853_v62 = vadd.f32 %v852_v60, %v851_v56 }
  0xea   :  { %v806_v63 = vpop.f32.mrf.mxu0  ;;  %v854_v0 = vpop.f32.mrf.mxu1 }
  0xeb   :  { %v668_v1 = vadd.f32 %v805_v61, %v1143_v51  ;;  %v684_v2 = vadd.f32 %v853_v62, %v1143_v51 }
  0xec   :  { %v807_v3 = vpop.f32.mrf.mxu0  ;;  %v855_v4 = vpop.f32.mrf.mxu1 }
  0xed   :  { %700 = vst [vmem:[%s1276_s3 + $0x8] sm:$0xff] %v668_v1  ;;  %716 = vst [vmem:[%s1276_s3 + $0x88] sm:$0xff] %v684_v2  ;;  %v808_v5 = vadd.f32 %v807_v3, %v806_v63  ;;  %v856_v6 = vadd.f32 %v855_v4, %v854_v0 }
  0xee   :  { %v809_v7 = vpop.f32.mrf.mxu0  ;;  %v857_v8 = vpop.f32.mrf.mxu1 }
  0xef   :  { %v669_v9 = vadd.f32 %v808_v5, %v1143_v51  ;;  %v685_v10 = vadd.f32 %v856_v6, %v1143_v51 }
  0xf0   :  { %v810_v11 = vpop.f32.mrf.mxu0  ;;  %v858_v12 = vpop.f32.mrf.mxu1 }
  0xf1   :  { %701 = vst [vmem:[%s1276_s3 + $0x10] sm:$0xff] %v669_v9  ;;  %717 = vst [vmem:[%s1276_s3 + $0x90] sm:$0xff] %v685_v10  ;;  %v811_v13 = vadd.f32 %v810_v11, %v809_v7  ;;  %v859_v14 = vadd.f32 %v858_v12, %v857_v8 }
  0xf2   :  { %v812_v15 = vpop.f32.mrf.mxu0  ;;  %v860_v16 = vpop.f32.mrf.mxu1 }
  0xf3   :  { %v670_v17 = vadd.f32 %v811_v13, %v1143_v51  ;;  %v686_v18 = vadd.f32 %v859_v14, %v1143_v51 }
  0xf4   :  { %v813_v19 = vpop.f32.mrf.mxu0  ;;  %v861_v20 = vpop.f32.mrf.mxu1 }
  0xf5   :  { %702 = vst [vmem:[%s1276_s3 + $0x18] sm:$0xff] %v670_v17  ;;  %718 = vst [vmem:[%s1276_s3 + $0x98] sm:$0xff] %v686_v18  ;;  %v814_v21 = vadd.f32 %v813_v19, %v812_v15  ;;  %v862_v22 = vadd.f32 %v861_v20, %v860_v16 }
  0xf6   :  { %v815_v23 = vpop.f32.mrf.mxu0  ;;  %v863_v24 = vpop.f32.mrf.mxu1 }
  0xf7   :  { %v671_v25 = vadd.f32 %v814_v21, %v1143_v51  ;;  %v687_v26 = vadd.f32 %v862_v22, %v1143_v51 }
  0xf8   :  { %v816_v27 = vpop.f32.mrf.mxu0  ;;  %v864_v28 = vpop.f32.mrf.mxu1 }
  0xf9   :  { %703 = vst [vmem:[%s1276_s3 + $0x20] sm:$0xff] %v671_v25  ;;  %719 = vst [vmem:[%s1276_s3 + $0xa0] sm:$0xff] %v687_v26  ;;  %v817_v29 = vadd.f32 %v816_v27, %v815_v23  ;;  %v865_v30 = vadd.f32 %v864_v28, %v863_v24 }
  0xfa   :  { %v818_v31 = vpop.f32.mrf.mxu0  ;;  %v866_v32 = vpop.f32.mrf.mxu1 }
  0xfb   :  { %v672_v33 = vadd.f32 %v817_v29, %v1143_v51  ;;  %v688_v34 = vadd.f32 %v865_v30, %v1143_v51 }
  0xfc   :  { %v819_v35 = vpop.f32.mrf.mxu0  ;;  %v867_v36 = vpop.f32.mrf.mxu1 }
  0xfd   :  { %704 = vst [vmem:[%s1276_s3 + $0x28] sm:$0xff] %v672_v33  ;;  %720 = vst [vmem:[%s1276_s3 + $0xa8] sm:$0xff] %v688_v34  ;;  %v820_v37 = vadd.f32 %v819_v35, %v818_v31  ;;  %v868_v38 = vadd.f32 %v867_v36, %v866_v32 }
  0xfe   :  { %v821_v39 = vpop.f32.mrf.mxu0  ;;  %v869_v40 = vpop.f32.mrf.mxu1 }
  0xff   :  { %v673_v41 = vadd.f32 %v820_v37, %v1143_v51  ;;  %v689_v42 = vadd.f32 %v868_v38, %v1143_v51 }
 0x100   :  { %v822_v43 = vpop.f32.mrf.mxu0  ;;  %v870_v44 = vpop.f32.mrf.mxu1 }
 0x101   :  { %705 = vst [vmem:[%s1276_s3 + $0x30] sm:$0xff] %v673_v41  ;;  %721 = vst [vmem:[%s1276_s3 + $0xb0] sm:$0xff] %v689_v42  ;;  %v823_v45 = vadd.f32 %v822_v43, %v821_v39  ;;  %v871_v46 = vadd.f32 %v870_v44, %v869_v40 }
 0x102   :  { %v824_v47 = vpop.f32.mrf.mxu0  ;;  %v872_v48 = vpop.f32.mrf.mxu1 }
 0x103   :  { %v674_v49 = vadd.f32 %v823_v45, %v1143_v51  ;;  %v690_v50 = vadd.f32 %v871_v46, %v1143_v51 }
 0x104   :  { %v825_v52 = vpop.f32.mrf.mxu0  ;;  %v873_v53 = vpop.f32.mrf.mxu1 }
 0x105   :  { %706 = vst [vmem:[%s1276_s3 + $0x38] sm:$0xff] %v674_v49  ;;  %722 = vst [vmem:[%s1276_s3 + $0xb8] sm:$0xff] %v690_v50  ;;  %v826_v54 = vadd.f32 %v825_v52, %v824_v47  ;;  %v874_v55 = vadd.f32 %v873_v53, %v872_v48 }
 0x106   :  { %v827_v56 = vpop.f32.mrf.mxu0  ;;  %v875_v57 = vpop.f32.mrf.mxu1 }
 0x107   :  { %v675_v58 = vadd.f32 %v826_v54, %v1143_v51  ;;  %v691_v59 = vadd.f32 %v874_v55, %v1143_v51 }
 0x108   :  { %v828_v60 = vpop.f32.mrf.mxu0  ;;  %v876_v61 = vpop.f32.mrf.mxu1 }
 0x109   :  { %707 = vst [vmem:[%s1276_s3 + $0x40] sm:$0xff] %v675_v58  ;;  %723 = vst [vmem:[%s1276_s3 + $0xc0] sm:$0xff] %v691_v59  ;;  %v829_v62 = vadd.f32 %v828_v60, %v827_v56  ;;  %v877_v63 = vadd.f32 %v876_v61, %v875_v57 }
 0x10a   :  { %v830_v0 = vpop.f32.mrf.mxu0  ;;  %v878_v1 = vpop.f32.mrf.mxu1 }
 0x10b   :  { %v676_v2 = vadd.f32 %v829_v62, %v1143_v51  ;;  %v692_v3 = vadd.f32 %v877_v63, %v1143_v51 }
 0x10c   :  { %v831_v4 = vpop.f32.mrf.mxu0  ;;  %v879_v5 = vpop.f32.mrf.mxu1 }
 0x10d   :  { %708 = vst [vmem:[%s1276_s3 + $0x48] sm:$0xff] %v676_v2  ;;  %724 = vst [vmem:[%s1276_s3 + $0xc8] sm:$0xff] %v692_v3  ;;  %v832_v6 = vadd.f32 %v831_v4, %v830_v0  ;;  %v880_v7 = vadd.f32 %v879_v5, %v878_v1 }
 0x10e   :  { %v833_v8 = vpop.f32.mrf.mxu0  ;;  %v881_v9 = vpop.f32.mrf.mxu1 }
 0x10f   :  { %v677_v10 = vadd.f32 %v832_v6, %v1143_v51  ;;  %v693_v11 = vadd.f32 %v880_v7, %v1143_v51 }
 0x110   :  { %v834_v12 = vpop.f32.mrf.mxu0  ;;  %v882_v13 = vpop.f32.mrf.mxu1 }
 0x111   :  { %709 = vst [vmem:[%s1276_s3 + $0x50] sm:$0xff] %v677_v10  ;;  %725 = vst [vmem:[%s1276_s3 + $0xd0] sm:$0xff] %v693_v11  ;;  %v835_v14 = vadd.f32 %v834_v12, %v833_v8  ;;  %v883_v15 = vadd.f32 %v882_v13, %v881_v9 }
 0x112   :  { %v836_v16 = vpop.f32.mrf.mxu0  ;;  %v884_v17 = vpop.f32.mrf.mxu1 }
 0x113   :  { %v678_v18 = vadd.f32 %v835_v14, %v1143_v51  ;;  %v694_v19 = vadd.f32 %v883_v15, %v1143_v51 }
 0x114   :  { %v837_v20 = vpop.f32.mrf.mxu0  ;;  %v885_v21 = vpop.f32.mrf.mxu1 }
 0x115   :  { %710 = vst [vmem:[%s1276_s3 + $0x58] sm:$0xff] %v678_v18  ;;  %726 = vst [vmem:[%s1276_s3 + $0xd8] sm:$0xff] %v694_v19  ;;  %v838_v22 = vadd.f32 %v837_v20, %v836_v16  ;;  %v886_v23 = vadd.f32 %v885_v21, %v884_v17 }
 0x116   :  { %v839_v24 = vpop.f32.mrf.mxu0  ;;  %v887_v25 = vpop.f32.mrf.mxu1 }
 0x117   :  { %v679_v26 = vadd.f32 %v838_v22, %v1143_v51  ;;  %v695_v27 = vadd.f32 %v886_v23, %v1143_v51 }
 0x118   :  { %v840_v28 = vpop.f32.mrf.mxu0  ;;  %v888_v29 = vpop.f32.mrf.mxu1 }
 0x119   :  { %711 = vst [vmem:[%s1276_s3 + $0x60] sm:$0xff] %v679_v26  ;;  %727 = vst [vmem:[%s1276_s3 + $0xe0] sm:$0xff] %v695_v27  ;;  %v841_v30 = vadd.f32 %v840_v28, %v839_v24  ;;  %v889_v31 = vadd.f32 %v888_v29, %v887_v25 }
 0x11a   :  { %v842_v32 = vpop.f32.mrf.mxu0  ;;  %v890_v33 = vpop.f32.mrf.mxu1 }
 0x11b   :  { %v680_v34 = vadd.f32 %v841_v30, %v1143_v51  ;;  %v696_v35 = vadd.f32 %v889_v31, %v1143_v51 }
 0x11c   :  { %v843_v36 = vpop.f32.mrf.mxu0  ;;  %v891_v37 = vpop.f32.mrf.mxu1 }
 0x11d   :  { %712 = vst [vmem:[%s1276_s3 + $0x68] sm:$0xff] %v680_v34  ;;  %728 = vst [vmem:[%s1276_s3 + $0xe8] sm:$0xff] %v696_v35  ;;  %v844_v38 = vadd.f32 %v843_v36, %v842_v32  ;;  %v892_v39 = vadd.f32 %v891_v37, %v890_v33 }
 0x11e   :  { %v845_v40 = vpop.f32.mrf.mxu0  ;;  %v893_v41 = vpop.f32.mrf.mxu1 }
 0x11f   :  { %v681_v42 = vadd.f32 %v844_v38, %v1143_v51  ;;  %v697_v43 = vadd.f32 %v892_v39, %v1143_v51 }
 0x120   :  { %v846_v44 = vpop.f32.mrf.mxu0  ;;  %v894_v45 = vpop.f32.mrf.mxu1 }
 0x121   :  { %713 = vst [vmem:[%s1276_s3 + $0x70] sm:$0xff] %v681_v42  ;;  %729 = vst [vmem:[%s1276_s3 + $0xf0] sm:$0xff] %v697_v43  ;;  %v847_v46 = vadd.f32 %v846_v44, %v845_v40  ;;  %v895_v47 = vadd.f32 %v894_v45, %v893_v41 }
 0x123   :  { %v682_v48 = vadd.f32 %v847_v46, %v1143_v51  ;;  %v698_v49 = vadd.f32 %v895_v47, %v1143_v51 }
 0x125   :  { %714 = vst [vmem:[%s1276_s3 + $0x78] sm:$0xff] %v682_v48  ;;  %730 = vst [vmem:[%s1276_s3 + $0xf8] sm:$0xff] %v698_v49 }

// kernel: wavelet_forward.29
= control target key start
LH: loop header
LB: loop body
LE: loop exit
PB: predicated region body
PF: predicated region fallthrough
CT: control target
= control target key end

     0   :  { %s303_s1 = inlined_call_operand.vmem [shape: bf16[128,128], index: 1, kind: input, shape index: {}]   ;;  %s304_s0 = inlined_call_operand.vmem [shape: bf16[32,128], index: 0, kind: input, shape index: {}]   ;;  %s305_s2 = inlined_call_operand.vmem [shape: f32[1,128], index: 2, kind: input, shape index: {}]   ;;  %s306_s3 = inlined_call_operand.vmem [shape: f32[32,128], index: 3, kind: output, shape index: {}]  }
   0x1   :  { %v228_v0 = vld [vmem:[%s303_s1 + $0x38] sm:$0xff]   ;;  %v229_v1 = vld [vmem:[%s303_s1 + $0x30] sm:$0xff]   ;;  %v230_v2 = vld [vmem:[%s303_s1 + $0x28] sm:$0xff]  }
   0x2   :  { %208 = vmatprep.subr.bf16.mxu0 %v228_v0  ;;  %v231_v3 = vld [vmem:[%s303_s1 + $0x20] sm:$0xff]   ;;  %v232_v5 = vld [vmem:[%s303_s1 + $0x18] sm:$0xff]   ;;  %v233_v6 = vld [vmem:[%s303_s1 + $0x10] sm:$0xff]  }
   0x3   :  { %209 = vmatpush3.bf16.msra.mxu0 %v228_v0  ;;  %v236_v4 = vld [vmem:[%s304_s0] sm:$0xff]   ;;  %v234_v7 = vld [vmem:[%s303_s1 + $0x8] sm:$0xff]  }
   0x4   :  { %210 = vmatprep.subr.bf16.mxu0 %v229_v1  ;;  %224 = vmatprep.mubr.bf16.mxu0 %v236_v4  ;;  %v235_v8 = vld [vmem:[%s303_s1] sm:$0xff]   ;;  %v237_v9 = vld [vmem:[%s304_s0 + $0x8] sm:$0xff]  }
   0x5   :  { %v197_v10 = vld [vmem:[%s305_s2] ss:$0 sm:$0xff] }
   0x7   :  { %211 = vmatpush3.bf16.msra.mxu0 %v229_v1 }
   0x8   :  { %212 = vmatprep.subr.bf16.mxu0 %v230_v2 }
   0xb   :  { %213 = vmatpush3.bf16.msra.mxu0 %v230_v2 }
   0xc   :  { %214 = vmatprep.subr.bf16.mxu0 %v231_v3 }
   0xf   :  { %215 = vmatpush3.bf16.msra.mxu0 %v231_v3 }
  0x10   :  { %216 = vmatprep.subr.bf16.mxu0 %v232_v5 }
  0x13   :  { %217 = vmatpush3.bf16.msra.mxu0 %v232_v5 }
  0x14   :  { %218 = vmatprep.subr.bf16.mxu0 %v233_v6 }
  0x17   :  { %219 = vmatpush3.bf16.msra.mxu0 %v233_v6 }
  0x18   :  { %220 = vmatprep.subr.bf16.mxu0 %v234_v7 }
  0x1b   :  { %221 = vmatpush3.bf16.msra.mxu0 %v234_v7 }
  0x1c   :  { %222 = vmatprep.subr.bf16.mxu0 %v235_v8 }
  0x1f   :  { %223 = vmatpush3.bf16.msra.mxu0 %v235_v8 }
  0x22   :  { %225 = vmatmul.mubr.bf16.vlgmr.msra.gmra.mxu0 %v237_v9 }
  0xe2   :  { %v226_v11 = vpop.f32.mrf.mxu0 }
  0xe3   :  { %v177_v12 = vadd.f32 %v226_v11, %v197_v10 }
  0xe4   :  { %v141_v13 = vpop.f32.mrf.mxu0 }
  0xe5   :  { %181 = vst [vmem:[%s306_s3 + $0x10] sm:$0xff] %v177_v12  ;;  %v175_v14 = vadd.f32 %v197_v10, %v141_v13 }
  0xe6   :  { %v227_v15 = vpop.f32.mrf.mxu0 }
  0xe7   :  { %179 = vst [vmem:[%s306_s3] sm:$0xff] %v175_v14  ;;  %v178_v16 = vadd.f32 %v227_v15, %v197_v10 }
  0xe8   :  { %v144_v17 = vpop.f32.mrf.mxu0 }
  0xe9   :  { %182 = vst [vmem:[%s306_s3 + $0x18] sm:$0xff] %v178_v16  ;;  %v176_v18 = vadd.f32 %v197_v10, %v144_v17 }
  0xeb   :  { %180 = vst [vmem:[%s306_s3 + $0x8] sm:$0xff] %v176_v18 }

// kernel: wavelet_forward.30
= control target key start
LH: loop header
LB: loop body
LE: loop exit
PB: predicated region body
PF: predicated region fallthrough
CT: control target
= control target key end

     0   :  { %s441_s1 = inlined_call_operand.vmem [shape: bf16[256,128], index: 1, kind: input, shape index: {}]   ;;  %s442_s0 = inlined_call_operand.vmem [shape: bf16[32,256], index: 0, kind: input, shape index: {}]   ;;  %s443_s2 = inlined_call_operand.vmem [shape: f32[1,128], index: 2, kind: input, shape index: {}]   ;;  %s444_s3 = inlined_call_operand.vmem [shape: f32[32,128], index: 3, kind: output, shape index: {}]  }
   0x1   :  { %v324_v0 = vld [vmem:[%s441_s1 + $0x78] sm:$0xff]   ;;  %v326_v2 = vld [vmem:[%s441_s1 + $0x70] sm:$0xff]   ;;  %v328_v4 = vld [vmem:[%s441_s1 + $0x68] sm:$0xff]  }
   0x2   :  { %v325_v1 = vld [vmem:[%s441_s1 + $0x38] sm:$0xff]   ;;  %280 = vmatprep.subr.bf16.mxu0 %v324_v0  ;;  %308 = vmatprep.subr.bf16.mxu1 %v324_v0  ;;  %v327_v3 = vld [vmem:[%s441_s1 + $0x30] sm:$0xff]   ;;  %v329_v5 = vld [vmem:[%s441_s1 + $0x28] sm:$0xff]  }
   0x3   :  { %281 = vmatpush3.bf16.msra.mxu0 %v325_v1  ;;  %316 = vmatpush3.bf16.msra.mxu1 %v325_v1  ;;  %v330_v6 = vld [vmem:[%s441_s1 + $0x60] sm:$0xff]   ;;  %v332_v8 = vld [vmem:[%s441_s1 + $0x58] sm:$0xff]   ;;  %v334_v10 = vld [vmem:[%s441_s1 + $0x50] sm:$0xff]  }
   0x4   :  { %282 = vmatprep.subr.bf16.mxu0 %v326_v2  ;;  %309 = vmatprep.subr.bf16.mxu1 %v326_v2  ;;  %v331_v7 = vld [vmem:[%s441_s1 + $0x20] sm:$0xff]   ;;  %v333_v9 = vld [vmem:[%s441_s1 + $0x18] sm:$0xff]   ;;  %v335_v13 = vld [vmem:[%s441_s1 + $0x10] sm:$0xff]  }
   0x5   :  { %v342_v11 = vld [vmem:[%s442_s0 + $0x4] ss:$8 sps:$4 sm:$0xff]   ;;  %v345_v12 = vld [vmem:[%s442_s0 + $0x14] ss:$8 sps:$4 sm:$0xff]   ;;  %v340_v18 = vld [vmem:[%s442_s0] ss:$8 sps:$4 sm:$0xff]  }
   0x6   :  { %v336_v14 = vld [vmem:[%s441_s1 + $0x48] sm:$0xff]   ;;  %211 = vmatprep.mubr.bf16.mxu0 %v342_v11  ;;  %219 = vmatprep.mubr.bf16.mxu1 %v345_v12  ;;  %v338_v16 = vld [vmem:[%s441_s1 + $0x40] sm:$0xff]   ;;  %v343_v19 = vld [vmem:[%s442_s0 + $0x10] ss:$8 sps:$4 sm:$0xff]  }
   0x7   :  { %283 = vmatpush3.bf16.msra.mxu0 %v327_v3  ;;  %317 = vmatpush3.bf16.msra.mxu1 %v327_v3  ;;  %v337_v15 = vld [vmem:[%s441_s1 + $0x8] sm:$0xff]   ;;  %v339_v17 = vld [vmem:[%s441_s1] sm:$0xff]  }
   0x8   :  { %284 = vmatprep.subr.bf16.mxu0 %v328_v4  ;;  %310 = vmatprep.subr.bf16.mxu1 %v328_v4  ;;  %v279_v23 = vld [vmem:[%s443_s2] ss:$0 sm:$0xff] }
   0xb   :  { %285 = vmatpush3.bf16.msra.mxu0 %v329_v5  ;;  %318 = vmatpush3.bf16.msra.mxu1 %v329_v5 }
   0xc   :  { %286 = vmatprep.subr.bf16.mxu0 %v330_v6  ;;  %311 = vmatprep.subr.bf16.mxu1 %v330_v6 }
   0xf   :  { %287 = vmatpush3.bf16.msra.mxu0 %v331_v7  ;;  %319 = vmatpush3.bf16.msra.mxu1 %v331_v7 }
  0x10   :  { %288 = vmatprep.subr.bf16.mxu0 %v332_v8  ;;  %312 = vmatprep.subr.bf16.mxu1 %v332_v8 }
  0x13   :  { %289 = vmatpush3.bf16.msra.mxu0 %v333_v9  ;;  %320 = vmatpush3.bf16.msra.mxu1 %v333_v9 }
  0x14   :  { %290 = vmatprep.subr.bf16.mxu0 %v334_v10  ;;  %313 = vmatprep.subr.bf16.mxu1 %v334_v10 }
  0x17   :  { %291 = vmatpush3.bf16.msra.mxu0 %v335_v13  ;;  %321 = vmatpush3.bf16.msra.mxu1 %v335_v13 }
  0x18   :  { %292 = vmatprep.subr.bf16.mxu0 %v336_v14  ;;  %314 = vmatprep.subr.bf16.mxu1 %v336_v14 }
  0x1b   :  { %293 = vmatpush3.bf16.msra.mxu0 %v337_v15  ;;  %322 = vmatpush3.bf16.msra.mxu1 %v337_v15 }
  0x1c   :  { %294 = vmatprep.subr.bf16.mxu0 %v338_v16  ;;  %315 = vmatprep.subr.bf16.mxu1 %v338_v16 }
  0x1f   :  { %295 = vmatpush3.bf16.msra.mxu0 %v339_v17  ;;  %323 = vmatpush3.bf16.msra.mxu1 %v339_v17 }
  0x22   :  { %212 = vmatmul.mubr.bf16.vlgmr.msra.gmra.mxu0 %v340_v18  ;;  %220 = vmatmul.mubr.bf16.vlgmr.msra.gmra.mxu1 %v343_v19 }
  0xe2   :  { %v296_v20 = vpop.f32.mrf.mxu0  ;;  %v302_v21 = vpop.f32.mrf.mxu1 }
  0xe4   :  { %v297_v22 = vpop.f32.mrf.mxu0  ;;  %v303_v24 = vpop.f32.mrf.mxu1 }
  0xe5   :  { %v298_v25 = vadd.f32 %v297_v22, %v296_v20  ;;  %v304_v26 = vadd.f32 %v303_v24, %v302_v21 }
  0xe6   :  { %v299_v27 = vpop.f32.mrf.mxu0  ;;  %v305_v28 = vpop.f32.mrf.mxu1 }
  0xe7   :  { %v247_v29 = vadd.f32 %v298_v25, %v279_v23  ;;  %v249_v30 = vadd.f32 %v304_v26, %v279_v23 }
  0xe8   :  { %v300_v31 = vpop.f32.mrf.mxu0  ;;  %v306_v32 = vpop.f32.mrf.mxu1 }
  0xe9   :  { %251 = vst [vmem:[%s444_s3] sm:$0xff] %v247_v29  ;;  %253 = vst [vmem:[%s444_s3 + $0x10] sm:$0xff] %v249_v30  ;;  %v301_v33 = vadd.f32 %v300_v31, %v299_v27  ;;  %v307_v34 = vadd.f32 %v306_v32, %v305_v28 }
  0xeb   :  { %v248_v35 = vadd.f32 %v301_v33, %v279_v23  ;;  %v250_v36 = vadd.f32 %v307_v34, %v279_v23 }
  0xed   :  { %252 = vst [vmem:[%s444_s3 + $0x8] sm:$0xff] %v248_v35  ;;  %254 = vst [vmem:[%s444_s3 + $0x18] sm:$0xff] %v250_v36 }

// kernel: wavelet_forward.27
= control target key start
LH: loop header
LB: loop body
LE: loop exit
PB: predicated region body
PF: predicated region fallthrough
CT: control target
= control target key end

     0   :  { %v286_v0 = vmov 0.0   ;;  %vm287_vm0 = vmmov 0   ;;  %s362_s1 = inlined_call_operand.vmem [shape: bf16[128,128], index: 1, kind: input, shape index: {}]   ;;  %s363_s0 = inlined_call_operand.vmem [shape: bf16[40,128], index: 0, kind: input, shape index: {}]   ;;  %s364_s2 = inlined_call_operand.vmem [shape: f32[1,128], index: 2, kind: input, shape index: {}]   ;;  %s365_s3 = inlined_call_operand.vmem [shape: f32[40,128], index: 3, kind: output, shape index: {}]  }
   0x1   :  { %257 = vmatprep.subr.bf16.mxu1 %v286_v0  ;;  %229 = vmatprep.subr.bf16.mxu0 %v286_v0  ;;  %v275_v1 = vld [vmem:[%s362_s1 + $0x38] sm:$0xff]   ;;  %v276_v2 = vld [vmem:[%s362_s1 + $0x30] sm:$0xff]   ;;  %v277_v3 = vld [vmem:[%s362_s1 + $0x28] sm:$0xff]  }
   0x2   :  { %249 = vmatprep.mubr.msk.bf16.mxu1 %vm287_vm0, %v286_v0  ;;  %245 = vmatprep.mubr.msk.bf16.mxu0 %vm287_vm0, %v286_v0  ;;  %v278_v4 = vld [vmem:[%s362_s1 + $0x20] sm:$0xff]   ;;  %v279_v5 = vld [vmem:[%s362_s1 + $0x18] sm:$0xff]   ;;  %v280_v6 = vld [vmem:[%s362_s1 + $0x10] sm:$0xff]  }
   0x3   :  { %265 = vmatpush3.bf16.msra.mxu1 %v275_v1  ;;  %230 = vmatpush3.bf16.msra.mxu0 %v275_v1  ;;  %v281_v7 = vld [vmem:[%s362_s1 + $0x8] sm:$0xff]   ;;  %v282_v8 = vld [vmem:[%s362_s1] sm:$0xff]   ;;  %v285_v11 = vld [vmem:[%s363_s0 + $0x10] ss:$0 sps:$4 sm:$0xff]  }
   0x4   :  { %258 = vmatprep.subr.bf16.mxu1 %v286_v0  ;;  %231 = vmatprep.subr.bf16.mxu0 %v286_v0  ;;  %v283_v9 = vld [vmem:[%s363_s0 + $0x8] sm:$0xff]   ;;  %v284_v10 = vld [vmem:[%s363_s0] sm:$0xff]  }
   0x5   :  { %v217_v12 = vld [vmem:[%s364_s2] ss:$0 sm:$0xff] }
   0x7   :  { %266 = vmatpush3.bf16.msra.mxu1 %v276_v2  ;;  %232 = vmatpush3.bf16.msra.mxu0 %v276_v2 }
   0x8   :  { %259 = vmatprep.subr.bf16.mxu1 %v286_v0  ;;  %233 = vmatprep.subr.bf16.mxu0 %v286_v0 }
   0xb   :  { %267 = vmatpush3.bf16.msra.mxu1 %v277_v3  ;;  %234 = vmatpush3.bf16.msra.mxu0 %v277_v3 }
   0xc   :  { %260 = vmatprep.subr.bf16.mxu1 %v286_v0  ;;  %235 = vmatprep.subr.bf16.mxu0 %v286_v0 }
   0xf   :  { %268 = vmatpush3.bf16.msra.mxu1 %v278_v4  ;;  %236 = vmatpush3.bf16.msra.mxu0 %v278_v4 }
  0x10   :  { %261 = vmatprep.subr.bf16.mxu1 %v286_v0  ;;  %237 = vmatprep.subr.bf16.mxu0 %v286_v0 }
  0x13   :  { %269 = vmatpush3.bf16.msra.mxu1 %v279_v5  ;;  %238 = vmatpush3.bf16.msra.mxu0 %v279_v5 }
  0x14   :  { %262 = vmatprep.subr.bf16.mxu1 %v286_v0  ;;  %239 = vmatprep.subr.bf16.mxu0 %v286_v0 }
  0x17   :  { %270 = vmatpush3.bf16.msra.mxu1 %v280_v6  ;;  %240 = vmatpush3.bf16.msra.mxu0 %v280_v6 }
  0x18   :  { %263 = vmatprep.subr.bf16.mxu1 %v286_v0  ;;  %241 = vmatprep.subr.bf16.mxu0 %v286_v0 }
  0x1b   :  { %271 = vmatpush3.bf16.msra.mxu1 %v281_v7  ;;  %242 = vmatpush3.bf16.msra.mxu0 %v281_v7 }
  0x1c   :  { %264 = vmatprep.subr.bf16.mxu1 %v286_v0  ;;  %243 = vmatprep.subr.bf16.mxu0 %v286_v0 }
  0x1f   :  { %272 = vmatpush3.bf16.msra.mxu1 %v282_v8  ;;  %244 = vmatpush3.bf16.msra.mxu0 %v282_v8 }
  0x22   :  { %250 = vmatmul.mubr.bf16.vlgmr.msra.gmra.mxu1 %v283_v9  ;;  %246 = vmatmul.mubr.bf16.vlgmr.msra.gmra.mxu0 %v284_v10 }
  0x23   :  { %253 = vmatprep.mubr.msk.bf16.mxu1 %vm287_vm0, %v286_v0 }
  0x2a   :  { %254 = vmatmul.mubr.bf16.gmra.mxu1 %v285_v11 }
  0xe2   :  { %v156_v13 = vpop.f32.mrf.mxu1  ;;  %v148_v14 = vpop.f32.mrf.mxu0 }
  0xe3   :  { %v194_v15 = vadd.f32 %v217_v12, %v156_v13  ;;  %v192_v16 = vadd.f32 %v217_v12, %v148_v14 }
  0xe4   :  { %v251_v17 = vpop.f32.mrf.mxu1  ;;  %v247_v18 = vpop.f32.mrf.mxu0 }
  0xe5   :  { %199 = vst [vmem:[%s365_s3 + $0x10] sm:$0xff] %v194_v15  ;;  %197 = vst [vmem:[%s365_s3] sm:$0xff] %v192_v16 }
  0xe6   :  { %v159_v19 = vpop.f32.mrf.mxu1  ;;  %v151_v20 = vpop.f32.mrf.mxu0 }
  0xe7   :  { %v195_v21 = vadd.f32 %v217_v12, %v159_v19  ;;  %v193_v22 = vadd.f32 %v217_v12, %v151_v20 }
  0xe8   :  { %v252_v23 = vpop.f32.mrf.mxu1  ;;  %v248_v24 = vpop.f32.mrf.mxu0 }
  0xe9   :  { %200 = vst [vmem:[%s365_s3 + $0x18] sm:$0xff] %v195_v21  ;;  %198 = vst [vmem:[%s365_s3 + $0x8] sm:$0xff] %v193_v22 }
  0xea   :  { %v164_v25 = vpop.f32.mrf.mxu1 }
  0xeb   :  { %v196_v26 = vadd.f32 %v217_v12, %v164_v25 }
  0xec   :  { %v255_v27 = vpop.f32.mrf.mxu1 }
  0xed   :  { %201 = vst [vmem:[%s365_s3 + $0x20] sm:$0xff] %v196_v26 }
  0xee   :  { %v167_v28 = vpop.f32.mrf.mxu1 }
  0xf0   :  { %v256_v29 = vpop.f32.mrf.mxu1 }

// kernel: wavelet_forward.28
= control target key start
LH: loop header
LB: loop body
LE: loop exit
PB: predicated region body
PF: predicated region fallthrough
CT: control target
= control target key end

     0   :  { %s479_s1 = inlined_call_operand.vmem [shape: bf16[256,128], index: 1, kind: input, shape index: {}]   ;;  %s480_s0 = inlined_call_operand.vmem [shape: bf16[40,256], index: 0, kind: input, shape index: {}]   ;;  %s481_s2 = inlined_call_operand.vmem [shape: f32[1,128], index: 2, kind: input, shape index: {}]   ;;  %s482_s3 = inlined_call_operand.vmem [shape: f32[40,128], index: 3, kind: output, shape index: {}]  }
   0x1   :  { %v354_v0 = vld [vmem:[%s479_s1 + $0x78] sm:$0xff]   ;;  %v356_v2 = vld [vmem:[%s479_s1 + $0x70] sm:$0xff]   ;;  %v358_v4 = vld [vmem:[%s479_s1 + $0x68] sm:$0xff]  }
   0x2   :  { %v355_v1 = vld [vmem:[%s479_s1 + $0x38] sm:$0xff]   ;;  %304 = vmatprep.subr.bf16.mxu0 %v354_v0  ;;  %338 = vmatprep.subr.bf16.mxu1 %v354_v0  ;;  %v357_v3 = vld [vmem:[%s479_s1 + $0x30] sm:$0xff]   ;;  %v359_v5 = vld [vmem:[%s479_s1 + $0x28] sm:$0xff]  }
   0x3   :  { %305 = vmatpush3.bf16.msra.mxu0 %v355_v1  ;;  %346 = vmatpush3.bf16.msra.mxu1 %v355_v1  ;;  %v360_v6 = vld [vmem:[%s479_s1 + $0x60] sm:$0xff]   ;;  %v362_v8 = vld [vmem:[%s479_s1 + $0x58] sm:$0xff]   ;;  %v364_v10 = vld [vmem:[%s479_s1 + $0x50] sm:$0xff]  }
   0x4   :  { %306 = vmatprep.subr.bf16.mxu0 %v356_v2  ;;  %339 = vmatprep.subr.bf16.mxu1 %v356_v2  ;;  %v361_v7 = vld [vmem:[%s479_s1 + $0x20] sm:$0xff]   ;;  %v363_v9 = vld [vmem:[%s479_s1 + $0x18] sm:$0xff]   ;;  %v365_v13 = vld [vmem:[%s479_s1 + $0x10] sm:$0xff]  }
   0x5   :  { %v372_v11 = vld [vmem:[%s480_s0 + $0x4] ss:$8 sps:$4 sm:$0xff]   ;;  %v375_v12 = vld [vmem:[%s480_s0 + $0x14] ss:$8 sps:$4 sm:$0xff]   ;;  %v370_v19 = vld [vmem:[%s480_s0] ss:$8 sps:$4 sm:$0xff]  }
   0x6   :  { %v366_v14 = vld [vmem:[%s479_s1 + $0x48] sm:$0xff]   ;;  %221 = vmatprep.mubr.bf16.mxu0 %v372_v11  ;;  %229 = vmatprep.mubr.bf16.mxu1 %v375_v12  ;;  %v368_v16 = vld [vmem:[%s479_s1 + $0x40] sm:$0xff]   ;;  %v373_v20 = vld [vmem:[%s480_s0 + $0x10] ss:$8 sps:$4 sm:$0xff]  }
   0x7   :  { %307 = vmatpush3.bf16.msra.mxu0 %v357_v3  ;;  %347 = vmatpush3.bf16.msra.mxu1 %v357_v3  ;;  %v367_v15 = vld [vmem:[%s479_s1 + $0x8] sm:$0xff]   ;;  %v369_v17 = vld [vmem:[%s479_s1] sm:$0xff]  }
   0x8   :  { %308 = vmatprep.subr.bf16.mxu0 %v358_v4  ;;  %340 = vmatprep.subr.bf16.mxu1 %v358_v4  ;;  %v33_v18 = vld [vmem:[%s480_s0 + $0x20] sm:$0xff] }
   0x9   :  { %v286_v21 = vcombine.high %v33_v18, %v33_v18  ;;  %v285_v22 = vcombine.low %v33_v18, %v33_v18  ;;  %v303_v26 = vld [vmem:[%s481_s2] ss:$0 sm:$0xff] }
   0xb   :  { %309 = vmatpush3.bf16.msra.mxu0 %v359_v5  ;;  %348 = vmatpush3.bf16.msra.mxu1 %v359_v5 }
   0xc   :  { %310 = vmatprep.subr.bf16.mxu0 %v360_v6  ;;  %341 = vmatprep.subr.bf16.mxu1 %v360_v6 }
   0xf   :  { %311 = vmatpush3.bf16.msra.mxu0 %v361_v7  ;;  %349 = vmatpush3.bf16.msra.mxu1 %v361_v7 }
  0x10   :  { %312 = vmatprep.subr.bf16.mxu0 %v362_v8  ;;  %342 = vmatprep.subr.bf16.mxu1 %v362_v8 }
  0x13   :  { %313 = vmatpush3.bf16.msra.mxu0 %v363_v9  ;;  %350 = vmatpush3.bf16.msra.mxu1 %v363_v9 }
  0x14   :  { %314 = vmatprep.subr.bf16.mxu0 %v364_v10  ;;  %343 = vmatprep.subr.bf16.mxu1 %v364_v10 }
  0x17   :  { %315 = vmatpush3.bf16.msra.mxu0 %v365_v13  ;;  %351 = vmatpush3.bf16.msra.mxu1 %v365_v13 }
  0x18   :  { %316 = vmatprep.subr.bf16.mxu0 %v366_v14  ;;  %344 = vmatprep.subr.bf16.mxu1 %v366_v14 }
  0x1b   :  { %317 = vmatpush3.bf16.msra.mxu0 %v367_v15  ;;  %352 = vmatpush3.bf16.msra.mxu1 %v367_v15 }
  0x1c   :  { %318 = vmatprep.subr.bf16.mxu0 %v368_v16  ;;  %345 = vmatprep.subr.bf16.mxu1 %v368_v16 }
  0x1f   :  { %319 = vmatpush3.bf16.msra.mxu0 %v369_v17  ;;  %353 = vmatpush3.bf16.msra.mxu1 %v369_v17 }
  0x22   :  { %222 = vmatmul.mubr.bf16.vlgmr.msra.gmra.mxu0 %v370_v19  ;;  %230 = vmatmul.mubr.bf16.vlgmr.msra.gmra.mxu1 %v373_v20 }
  0x23   :  { %237 = vmatprep.mubr.bf16.mxu1 %v286_v21 }
  0x2a   :  { %238 = vmatmul.mubr.bf16.gmra.mxu1 %v285_v22 }
  0xe2   :  { %v320_v23 = vpop.f32.mrf.mxu0  ;;  %v326_v24 = vpop.f32.mrf.mxu1 }
  0xe4   :  { %v321_v25 = vpop.f32.mrf.mxu0  ;;  %v327_v27 = vpop.f32.mrf.mxu1 }
  0xe5   :  { %v322_v28 = vadd.f32 %v321_v25, %v320_v23  ;;  %v328_v29 = vadd.f32 %v327_v27, %v326_v24 }
  0xe6   :  { %v323_v30 = vpop.f32.mrf.mxu0  ;;  %v329_v31 = vpop.f32.mrf.mxu1 }
  0xe7   :  { %v267_v32 = vadd.f32 %v322_v28, %v303_v26  ;;  %v269_v33 = vadd.f32 %v328_v29, %v303_v26 }
  0xe8   :  { %v324_v34 = vpop.f32.mrf.mxu0  ;;  %v330_v35 = vpop.f32.mrf.mxu1 }
  0xe9   :  { %272 = vst [vmem:[%s482_s3] sm:$0xff] %v267_v32  ;;  %274 = vst [vmem:[%s482_s3 + $0x10] sm:$0xff] %v269_v33  ;;  %v325_v36 = vadd.f32 %v324_v34, %v323_v30  ;;  %v331_v37 = vadd.f32 %v330_v35, %v329_v31 }
  0xea   :  { %v332_v38 = vpop.f32.mrf.mxu1 }
  0xeb   :  { %v268_v39 = vadd.f32 %v325_v36, %v303_v26  ;;  %v270_v40 = vadd.f32 %v331_v37, %v303_v26 }
  0xec   :  { %v333_v41 = vpop.f32.mrf.mxu1 }
  0xed   :  { %273 = vst [vmem:[%s482_s3 + $0x8] sm:$0xff] %v268_v39  ;;  %275 = vst [vmem:[%s482_s3 + $0x18] sm:$0xff] %v270_v40  ;;  %v334_v42 = vadd.f32 %v333_v41, %v332_v38 }
  0xee   :  { %v335_v43 = vpop.f32.mrf.mxu1 }
  0xef   :  { %v271_v44 = vadd.f32 %v334_v42, %v303_v26 }
  0xf0   :  { %v336_v45 = vpop.f32.mrf.mxu1 }
  0xf1   :  { %276 = vst [vmem:[%s482_s3 + $0x20] sm:$0xff] %v271_v44 }

// kernel: wavelet_forward.35
= control target key start
LH: loop header
LB: loop body
LE: loop exit
PB: predicated region body
PF: predicated region fallthrough
CT: control target
= control target key end

     0   :  { %s273_s1 = inlined_call_operand.vmem [shape: f32[128,128], index: 1, kind: input, shape index: {}]   ;;  %s274_s0 = inlined_call_operand.vmem [shape: f32[16,128], index: 0, kind: input, shape index: {}]   ;;  %s275_s2 = inlined_call_operand.vmem [shape: f32[1,128], index: 2, kind: input, shape index: {}]   ;;  %s276_s3 = inlined_call_operand.vmem [shape: f32[16,128], index: 3, kind: output, shape index: {}]  }
   0x1   :  { %v39_v0 = vld [vmem:[%s273_s1 + $0x78] sm:$0xff]  ;;  %v38_v1 = vld [vmem:[%s273_s1 + $0x70] sm:$0xff]  ;;  %v37_v2 = vld [vmem:[%s273_s1 + $0x68] sm:$0xff] }
   0x2   :  { %155 = vmatprep.subr.mxu0 %v39_v0  ;;  %v36_v3 = vld [vmem:[%s273_s1 + $0x60] sm:$0xff]  ;;  %v35_v5 = vld [vmem:[%s273_s1 + $0x58] sm:$0xff]  ;;  %v34_v6 = vld [vmem:[%s273_s1 + $0x50] sm:$0xff] }
   0x3   :  { %156 = vmatpush3.msra.mxu0 %v39_v0  ;;  %v22_v4 = vld [vmem:[%s274_s0] sm:$0xff]  ;;  %v33_v7 = vld [vmem:[%s273_s1 + $0x48] sm:$0xff]  ;;  %v31_v9 = vld [vmem:[%s273_s1 + $0x38] sm:$0xff] }
   0x4   :  { %157 = vmatprep.subr.mxu0 %v38_v1  ;;  %187 = vmatprep.mubr.f32.mxu0 %v22_v4  ;;  %v32_v8 = vld [vmem:[%s273_s1 + $0x40] sm:$0xff]  ;;  %v30_v10 = vld [vmem:[%s273_s1 + $0x30] sm:$0xff]  ;;  %v29_v11 = vld [vmem:[%s273_s1 + $0x28] sm:$0xff] }
   0x5   :  { %158 = vmatpush3.msra.mxu0 %v38_v1  ;;  %v28_v12 = vld [vmem:[%s273_s1 + $0x20] sm:$0xff]  ;;  %v27_v13 = vld [vmem:[%s273_s1 + $0x18] sm:$0xff]  ;;  %v26_v14 = vld [vmem:[%s273_s1 + $0x10] sm:$0xff] }
   0x6   :  { %159 = vmatprep.subr.mxu0 %v37_v2  ;;  %v25_v15 = vld [vmem:[%s273_s1 + $0x8] sm:$0xff]  ;;  %v24_v16 = vld [vmem:[%s273_s1] sm:$0xff] }
   0x7   :  { %160 = vmatpush3.msra.mxu0 %v37_v2  ;;  %v23_v17 = vld [vmem:[%s274_s0 + $0x8] sm:$0xff]  ;;  %v136_v18 = vld [vmem:[%s275_s2] ss:$0 sm:$0xff] }
   0x8   :  { %161 = vmatprep.subr.mxu0 %v36_v3 }
   0x9   :  { %162 = vmatpush3.msra.mxu0 %v36_v3 }
   0xa   :  { %163 = vmatprep.subr.mxu0 %v35_v5 }
   0xb   :  { %164 = vmatpush3.msra.mxu0 %v35_v5 }
   0xc   :  { %165 = vmatprep.subr.mxu0 %v34_v6 }
   0xd   :  { %166 = vmatpush3.msra.mxu0 %v34_v6 }
   0xe   :  { %167 = vmatprep.subr.mxu0 %v33_v7 }
   0xf   :  { %168 = vmatpush3.msra.mxu0 %v33_v7 }
  0x10   :  { %169 = vmatprep.subr.mxu0 %v32_v8 }
  0x11   :  { %170 = vmatpush3.msra.mxu0 %v32_v8 }
  0x12   :  { %171 = vmatprep.subr.mxu0 %v31_v9 }
  0x13   :  { %172 = vmatpush3.msra.mxu0 %v31_v9 }
  0x14   :  { %173 = vmatprep.subr.mxu0 %v30_v10 }
  0x15   :  { %174 = vmatpush3.msra.mxu0 %v30_v10 }
  0x16   :  { %175 = vmatprep.subr.mxu0 %v29_v11 }
  0x17   :  { %176 = vmatpush3.msra.mxu0 %v29_v11 }
  0x18   :  { %177 = vmatprep.subr.mxu0 %v28_v12 }
  0x19   :  { %178 = vmatpush3.msra.mxu0 %v28_v12 }
  0x1a   :  { %179 = vmatprep.subr.mxu0 %v27_v13 }
  0x1b   :  { %180 = vmatpush3.msra.mxu0 %v27_v13 }
  0x1c   :  { %181 = vmatprep.subr.mxu0 %v26_v14 }
  0x1d   :  { %182 = vmatpush3.msra.mxu0 %v26_v14 }
  0x1e   :  { %183 = vmatprep.subr.mxu0 %v25_v15 }
  0x1f   :  { %184 = vmatpush3.msra.mxu0 %v25_v15 }
  0x20   :  { %185 = vmatprep.subr.mxu0 %v24_v16 }
  0x21   :  { %186 = vmatpush3.msra.mxu0 %v24_v16 }
  0x22   :  { %188 = vmatmul.mubr.f32.vlgmr.msra.gmra.mxu0 %v23_v17 }
  0xe2   :  { %v189_v19 = vpop.f32.mrf.mxu0 }
  0xe3   :  { %v129_v20 = vadd.f32 %v189_v19, %v136_v18 }
  0xe4   :  { %v106_v21 = vpop.f32.mrf.mxu0 }
  0xe5   :  { %131 = vst [vmem:[%s276_s3 + $0x8] sm:$0xff] %v129_v20  ;;  %v128_v22 = vadd.f32 %v136_v18, %v106_v21 }
  0xe7   :  { %130 = vst [vmem:[%s276_s3] sm:$0xff] %v128_v22 }

// kernel: wavelet_forward.34
= control target key start
LH: loop header
LB: loop body
LE: loop exit
PB: predicated region body
PF: predicated region fallthrough
CT: control target
= control target key end

     0   :  { %vm27_vm0 = vcmask 130048   ;;  %vm157_vm1 = vcmask 64512   ;;  %v554_v36 = vmov 0.0   ;;  %vm555_vm2 = vmmov 0   ;;  %s648_s1 = inlined_call_operand.vmem [shape: f32[16,16], index: 1, kind: input, shape index: {}]   ;;  %s649_s0 = inlined_call_operand.vmem [shape: f32[16,16], index: 0, kind: input, shape index: {}]   ;;  %s650_s4 = inlined_call_operand.vmem [shape: f32[16,8], index: 4, kind: input, shape index: {}]   ;;  %s651_s2 = inlined_call_operand.vmem [shape: f32[1,16], index: 2, kind: input, shape index: {}]   ;;  %s652_s3 = inlined_call_operand.vmem [shape: f32[1,16], index: 3, kind: input, shape index: {}]   ;;  %s653_s5 = inlined_call_operand.vmem [shape: f32[8,16], index: 5, kind: input, shape index: {}]   ;;  %s654_s6 = inlined_call_operand.vmem [shape: f32[16,16], index: 6, kind: output, shape index: {}]  }
   0x1   :  { %v26_v0 = vld [vmem:[%s648_s1 + $0x8] sm:$0xff]  ;;  %v25_v1 = vld [vmem:[%s648_s1] sm:$0xff] }
   0x2   :  { %v600_v2 = vld [vmem:[%s649_s0] sm:$0xff]  ;;  %509 = vmatprep.subr.mxu0 %v26_v0  ;;  %v607_v3 = vld [vmem:[%s649_s0 + $0x8] sm:$0xff] }
   0x3   :  { %513 = vmatprep.mubr.msk.f32.mxu0 %vm27_vm0, %v600_v2  ;;  %510 = vmatpush3.msra.mxu0 %v26_v0  ;;  %v154_v18 = vld [vmem:[%s650_s4] sm:$0xff]  ;;  %v155_v33 = vld [vmem:[%s650_s4 + $0x8] sm:$0xff] }
   0x4   :  { %511 = vmatprep.subr.mxu0 %v25_v1  ;;  %518 = vmatprep.mubr.msk.f32.mxu1 %vm157_vm1, %v154_v18  ;;  %v483_v26 = vld [vmem:[%s651_s2] ss:$0 sm:$0xff] }
   0x5   :  { %512 = vmatpush3.msra.mxu0 %v25_v1  ;;  %v484_v28 = vld [vmem:[%s652_s3] ss:$0 sm:$0xff] }
   0x6   :  { %514 = vmatmul.mubr.msk.f32.vlgmr.msra.gmra.mxu0 %vm27_vm0, %v607_v3  ;;  %v156_v41 = vld [vmem:[%s653_s5] sm:$0xff] }
   0x7   :  { %530 = vmatprep.mubr.msk.f32.mxu0 %vm157_vm1, %v154_v18 }
  0xc6   :  { %v515_v4 = vpop.f32.mrf.mxu0 }
  0xc7   :  { %v112_v7 = vsel %vm27_vm0, %v515_v4, 0.0 }
  0xc8   :  { %v100_v5 = vpop.f32.mrf.mxu0 }
  0xc9   :  { %v109_v6 = vsel %vm27_vm0, %v100_v5, 0.0 }
  0xca   :  { %110 = vadd.xlane.f32.xlu0 %v109_v6 }
  0xce   :  { %113 = vadd.xlane.f32.xlu0 %v112_v7 }
 0x153   :  { %v111_v8 = vpop.xlane.xlu0 %110 }
 0x154   :  { %v116_v9 = vmul.f32 0.0625, %v111_v8 }
 0x156   :  { %v118_v10 = vsub.f32 %v100_v5, %v116_v9 }
 0x157   :  { %v114_v11 = vpop.xlane.xlu0 %113 }
 0x158   :  { %v117_v12 = vmul.f32 0.0625, %v114_v11  ;;  %v120_v13 = vmul.f32 %v118_v10, %v118_v10 }
 0x15a   :  { %v119_v14 = vsub.f32 %v515_v4, %v117_v12  ;;  %v122_v15 = vsel %vm27_vm0, %v120_v13, 0.0 }
 0x15b   :  { %123 = vadd.xlane.f32.xlu1 %v122_v15 }
 0x15c   :  { %v121_v16 = vmul.f32 %v119_v14, %v119_v14 }
 0x15e   :  { %v125_v17 = vsel %vm27_vm0, %v121_v16, 0.0 }
 0x15f   :  { %126 = vadd.xlane.f32.xlu1 %v125_v17 }
 0x1e4   :  { %v124_v19 = vpop.xlane.xlu1 %123 }
 0x1e5   :  { %v128_v20 = vmul.f32 0.0625, %v124_v19 }
 0x1e7   :  { %v130_v21 = vadd.f32 1e-06, %v128_v20 }
 0x1e8   :  { %v127_v22 = vpop.xlane.xlu1 %126 }
 0x1e9   :  { %542 = vrsqrt.f32 %v130_v21  ;;  %v129_v23 = vmul.f32 0.0625, %v127_v22 }
 0x1eb   :  { %v131_v24 = vadd.f32 1e-06, %v129_v23 }
 0x1ed   :  { %544 = vrsqrt.f32 %v131_v24 }
 0x1f6   :  { %v543_v25 = vpop.eup %542 }
 0x1f7   :  { %v134_v27 = vmul.f32 %v543_v25, %v118_v10 }
 0x1f9   :  { %v143_v29 = vmul.f32 %v483_v26, %v134_v27 }
 0x1fa   :  { %v545_v30 = vpop.eup %544 }
 0x1fb   :  { %v135_v31 = vmul.f32 %v545_v30, %v119_v14  ;;  %v152_v32 = vadd.f32 %v484_v28, %v143_v29 }
 0x1fd   :  { %v144_v34 = vmul.f32 %v483_v26, %v135_v31  ;;  %516 = vmatprep.subr.mxu1 %v152_v32 }
 0x1fe   :  { %517 = vmatpush3.msra.mxu1 %v152_v32 }
 0x1ff   :  { %v153_v35 = vadd.f32 %v484_v28, %v144_v34  ;;  %519 = vmatmul.mubr.msk.f32.vlgmr.msra.gmra.mxu1 %vm157_vm1, %v155_v33  ;;  %521 = vmatprep.subr.mxu1 %v554_v36 }
 0x200   :  { %525 = vmatprep.mubr.msk.f32.mxu1 %vm555_vm2, %v554_v36 }
 0x201   :  { %528 = vmatprep.subr.mxu0 %v153_v35 }
 0x202   :  { %529 = vmatpush3.msra.mxu0 %v153_v35 }
 0x203   :  { %531 = vmatmul.mubr.msk.f32.vlgmr.msra.gmra.mxu0 %vm157_vm1, %v155_v33 }
 0x2bf   :  { %v520_v37 = vpop.f32.mrf.mxu1 }
 0x2c0   :  { %v240_v38 = vmax.f32 %v520_v37, 0.0 }
 0x2c1   :  { %v230_v39 = vpop.f32.mrf.mxu1 }
 0x2c2   :  { %v239_v40 = vmax.f32 %v230_v39, 0.0  ;;  %522 = vmatpush3.msra.mxu1 %v240_v38 }
 0x2c3   :  { %523 = vmatprep.subr.mxu1 %v554_v36  ;;  %v532_v42 = vpop.f32.mrf.mxu0 }
 0x2c4   :  { %v398_v43 = vmax.f32 %v532_v42, 0.0  ;;  %524 = vmatpush3.msra.mxu1 %v239_v40 }
 0x2c5   :  { %v388_v44 = vpop.f32.mrf.mxu0  ;;  %533 = vmatprep.subr.mxu1 %v554_v36  ;;  %526 = vmatmul.mubr.msk.f32.vlgmr.msra.gmra.mxu1 %vm27_vm0, %v156_v41 }
 0x2c6   :  { %v397_v45 = vmax.f32 %v388_v44, 0.0  ;;  %534 = vmatpush3.msra.mxu1 %v398_v43  ;;  %537 = vmatprep.mubr.msk.f32.mxu1 %vm555_vm2, %v554_v36 }
 0x2c7   :  { %535 = vmatprep.subr.mxu1 %v554_v36 }
 0x2c8   :  { %536 = vmatpush3.msra.mxu1 %v397_v45 }
 0x2c9   :  { %538 = vmatmul.mubr.msk.f32.vlgmr.msra.gmra.mxu1 %vm27_vm0, %v156_v41 }
 0x385   :  { %v310_v46 = vpop.f32.mrf.mxu1 }
 0x386   :  { %v488_v47 = vmul.f32 -1.442695, %v310_v46 }
 0x387   :  { %v527_v48 = vpop.f32.mrf.mxu1 }
 0x388   :  { %546 = vpow2.f32 %v488_v47 }
 0x389   :  { %v465_v49 = vpop.f32.mrf.mxu1 }
 0x38a   :  { %v492_v50 = vmul.f32 -1.442695, %v465_v49 }
 0x38b   :  { %v539_v51 = vpop.f32.mrf.mxu1 }
 0x38c   :  { %548 = vpow2.f32 %v492_v50 }
 0x395   :  { %v547_v52 = vpop.eup %546 }
 0x396   :  { %v317_v53 = vadd.f32 1.0, %v547_v52 }
 0x398   :  { %550 = vrcp.f32 %v317_v53 }
 0x399   :  { %v549_v54 = vpop.eup %548 }
 0x39a   :  { %v472_v55 = vadd.f32 1.0, %v549_v54 }
 0x39c   :  { %552 = vrcp.f32 %v472_v55 }
 0x3a5   :  { %v551_v56 = vpop.eup %550 }
 0x3a6   :  { %v320_v57 = vmul.f32 %v551_v56, %v600_v2 }
 0x3a8   :  { %321 = vst.msk [vmem:[%s654_s6] sm:$0xff] %vm27_vm0, %v320_v57 }
 0x3a9   :  { %v553_v58 = vpop.eup %552 }
 0x3aa   :  { %v475_v59 = vmul.f32 %v553_v58, %v607_v3 }
 0x3ac   :  { %476 = vst.msk [vmem:[%s654_s6 + $0x8] sm:$0xff] %vm27_vm0, %v475_v59 }

</bundles_post_ra>
